<compile_context>
chip_gen: v6e
topology: v6e:2x2x1
jax: 0.10.0
libtpu: 0.0.40
codegen_flags: <defaults>
</compile_context>

<pallas_src>
import functools
import math

import jax
import jax.numpy as jnp
import numpy as np
from jax.experimental import pallas as pl
from jax.experimental.pallas import tpu as pltpu

_LANE = 128


def _round_up(x, m):
    return ((x + m - 1) // m) * m


def _cdiv(a, b):
    return -(-a // b)


# ----------------------------- Pallas kernel ---------------------------------

def _kan_chain_kernel(x_ref, *refs, layer_meta, inv_sigma, lap_dtype):
    """Whole LaplacianKAN chain on one (TB, in_pad0) batch tile.

    refs layout: [grid_lanes_0, w_fused_0, ..., grid_lanes_{L-1}, w_fused_{L-1}, out_ref]
      grid_lanes_l : (n_blocks, in_pad) f32, grid values pre-scaled by 1/sigma; lane l of
                     block b holds grid[l % in_f, b*rep + l//in_f] (0 where padded).
      w_fused_l    : ((1+n_blocks)*in_pad, out_pad) bf16
                     rows [0, in_pad)                        -> base weight (transposed)
                     rows [(1+b)*in_pad, (2+b)*in_pad)       -> densely packed scaled
                                                                spline weights, block b.
    layer_meta: tuple of (in_f, in_pad, out_pad, n_blocks, rep) per layer (static).
    """
    out_ref = refs[-1]
    h = x_ref[...].astype(jnp.float32)                       # (TB, in_pad0), padded lanes 0

    for l, (in_f, in_p, out_p, n_blocks, rep) in enumerate(layer_meta):
        g_ref = refs[2 * l]                                   # (n_blocks, in_p) f32
        w_ref = refs[2 * l + 1]                               # ((1+n_blocks)*in_p, out_p) bf16

        # ---- base path: SiLU(h) @ W_base (K = in_p) -------------------------
        silu = h * jax.nn.sigmoid(h)                          # f32 (EUP sigmoid + VPU mul)
        acc = jnp.dot(silu.astype(jnp.bfloat16), w_ref[0:in_p, :],
                      preferred_element_type=jnp.float32)     # (TB, out_p) f32

        # ---- replicate the in_f real features across the 128-lane group -----
        # Padded lanes of h are exactly zero, so summing lane-rolls by multiples of
        # in_f (doubling: log2(rep) XLU rolls) yields lane l = x[l % in_f] exactly.
        x_rep = h
        if rep > 1:
            span = in_f
            while span < in_p:
                x_rep = x_rep + pltpu.roll(x_rep, span, 1)
                span *= 2
        xs = x_rep if inv_sigma == 1.0 else x_rep * jnp.float32(inv_sigma)
        xs = xs.astype(lap_dtype)

        # ---- Laplacian spline path: one densely packed lane-group per dot ----
        # exp (EUP) for block b+1 overlaps the MXU pass for block b; no feature-slab
        # concatenation / scratch round-trip is materialized.
        for b in range(n_blocks):
            g_row = g_ref[b:b + 1, :].astype(lap_dtype)       # (1, in_p)
            lap = jnp.exp(-jnp.abs(xs - g_row))               # (TB, in_p)
            acc = acc + jnp.dot(lap.astype(jnp.bfloat16),
                                w_ref[(1 + b) * in_p:(2 + b) * in_p, :],
                                preferred_element_type=jnp.float32)

        h = acc                                               # padded out cols are exact 0

    out_ref[...] = h.astype(out_ref.dtype)


# ------------------------- Parameter construction ----------------------------

def init_kan_params(key, layers_hidden, grid_size=5, scale_noise=0.1,
                    scale_base=1.0, scale_spline=1.0, grid_range=(-1.0, 1.0)):
    """Raw (torch-layout) params mirroring LaplacianKANLinear.reset_parameters shapes."""
    params = []
    h = (grid_range[1] - grid_range[0]) / grid_size
    grid_vals = jnp.arange(grid_size, dtype=jnp.float32) * h + grid_range[0]  # (G,)
    for in_f, out_f in zip(layers_hidden, layers_hidden[1:]):
        key, k1, k2, k3 = jax.random.split(key, 4)
        a_base = math.sqrt(5) * scale_base
        bound_base = math.sqrt(6.0 / ((1.0 + a_base ** 2) * in_f))
        base_weight = jax.random.uniform(k1, (out_f, in_f), jnp.float32,
                                         -bound_base, bound_base)
        noise = (jax.random.uniform(k2, (grid_size, in_f, out_f), jnp.float32) - 0.5) * scale_noise
        spline_weight = scale_spline * jnp.transpose(noise, (2, 1, 0))      # (out, in, G)
        a_spl = math.sqrt(5) * scale_spline
        bound_spl = math.sqrt(6.0 / ((1.0 + a_spl ** 2) * in_f))
        spline_scaler = jax.random.uniform(k3, (out_f, in_f), jnp.float32,
                                           -bound_spl, bound_spl)
        grid = jnp.broadcast_to(grid_vals[None, :], (in_f, grid_size))      # (in, G)
        params.append(dict(base_weight=base_weight, spline_weight=spline_weight,
                           spline_scaler=spline_scaler, grid=grid))
    return params


def pack_kan_layer(raw, *, sigma=1.0):
    """Pack one layer: dense-K layout (when 128 % in_f == 0), 128-lane padding, bf16 weights."""
    base_w = raw["base_weight"]                     # (out, in)
    spline_w = raw["spline_weight"]                 # (out, in, G)
    scaler = raw["spline_scaler"]                   # (out, in)
    grid = raw["grid"]                              # (in, G)
    out_f, in_f = base_w.shape
    G = grid.shape[1]

    dense = (in_f <= _LANE) and (_LANE % in_f == 0)
    if dense:
        in_p = _LANE
        rep = _LANE // in_f                          # grid points packed per lane group
    else:
        in_p = _round_up(in_f, _LANE)                # fallback: one padded group per grid pt
        rep = 1
    out_p = _round_up(out_f, _LANE)
    n_blocks = _cdiv(G, rep)
    g_pad_n = n_blocks * rep

    scaled = spline_w * scaler[:, :, None]          # (out, in, G)
    sp = jnp.transpose(scaled, (2, 1, 0))           # (G, in, out)

    if dense:
        sp_pad = jnp.zeros((g_pad_n, in_f, out_p), jnp.float32).at[:G, :, :out_f].set(sp)
        w_lap = sp_pad.reshape(n_blocks, rep * in_f, out_p).reshape(n_blocks * in_p, out_p)
        gp = jnp.zeros((g_pad_n, in_f), jnp.float32).at[:G, :].set(grid.T / sigma)
        grid_lanes = gp.reshape(n_blocks, in_p)
    else:
        sp_pad = jnp.zeros((G, in_p, out_p), jnp.float32).at[:, :in_f, :out_f].set(sp)
        w_lap = sp_pad.reshape(G * in_p, out_p)
        grid_lanes = jnp.zeros((G, in_p), jnp.float32).at[:, :in_f].set(grid.T / sigma)

    base_t = jnp.zeros((in_p, out_p), jnp.float32).at[:in_f, :out_f].set(base_w.T)
    w_fused = jnp.concatenate([base_t, w_lap], axis=0).astype(jnp.bfloat16)

    return dict(grid_lanes=grid_lanes, w_fused=w_fused, in_f=in_f, out_f=out_f,
                in_p=in_p, out_p=out_p, grid_size=G, n_blocks=n_blocks, rep=rep)


# ------------------------------ Forward pass ----------------------------------

def laplacian_kan_forward(x, packed_layers, *, sigma=1.0, block_batch=None):
    """x: (..., in_features). Runs the full KAN chain in one pallas_call."""
    orig_shape = x.shape
    x2 = x.reshape(-1, orig_shape[-1]).astype(jnp.float32)
    B = x2.shape[0]

    first, last = packed_layers[0], packed_layers[-1]
    in0, in_p0 = first["in_f"], first["in_p"]
    out_last, out_p_last = last["out_f"], last["out_p"]

    # Per-generation knobs from the device kind (robust to unknown strings).
    kind = ""
    try:
        kind = jax.devices()[0].device_kind.lower()
    except Exception:
        pass
    is_v7 = ("v7" in kind) or ("tpu7" in kind)
    old_eup = any(t in kind for t in ("v2", "v3", "v4", "v5"))
    lap_dtype = jnp.float32 if old_eup else jnp.bfloat16   # bf16 EUP path on v6e/v7x

    # Batch tiling: big tiles (1024) everywhere; guarantee >=2 tiles on v7x so the
    # "parallel" batch axis can shard across its 2 TensorCores.
    if block_batch is None:
        block_batch = 1024
    min_tiles = 2 if is_v7 else 1
    tb = max(8, min(block_batch, _round_up(_cdiv(B, min_tiles), 8)))
    b_pad = _round_up(B, tb)
    n_tiles = b_pad // tb

    x_pad = jnp.zeros((b_pad, in_p0), jnp.float32).at[:B, :in0].set(x2)

    layer_meta = tuple((p["in_f"], p["in_p"], p["out_p"], p["n_blocks"], p["rep"])
                       for p in packed_layers)
    kernel = functools.partial(_kan_chain_kernel, layer_meta=layer_meta,
                               inv_sigma=float(1.0 / sigma), lap_dtype=lap_dtype)

    # Need-based VMEM budget, capped at 75% of physical per-TC VMEM.
    weight_bytes = sum(int(np.prod(p["w_fused"].shape)) * 2 +
                       int(np.prod(p["grid_lanes"].shape)) * 4 for p in packed_layers)
    max_w = max(max(p["in_p"], p["out_p"]) for p in packed_layers)
    io_bytes = 2 * tb * in_p0 * 4 + 2 * tb * out_p_last * 2     # double-buffered x / out
    live_bytes = 12 * tb * max_w * 4                            # in-flight values headroom
    phys_vmem = (64 if is_v7 else 128) * 1024 * 1024
    vmem_limit = int(min(phys_vmem * 3 // 4,
                         max(2 * (weight_bytes + io_bytes + live_bytes),
                             32 * 1024 * 1024)))

    def _call(single_buffered_weights):
        in_specs = [pl.BlockSpec((tb, in_p0), lambda i: (i, 0))]
        operands = [x_pad]
        for p in packed_layers:
            for arr in (p["grid_lanes"], p["w_fused"]):
                spec = None
                if single_buffered_weights and hasattr(pl, "Buffered"):
                    try:
                        # Grid-invariant operand: single resident buffer (halves weight VMEM).
                        spec = pl.BlockSpec(arr.shape, lambda i: (0, 0),
                                            pipeline_mode=pl.Buffered(1))
                    except Exception:
                        spec = None
                if spec is None:
                    spec = pl.BlockSpec(arr.shape, lambda i: (0, 0))
                in_specs.append(spec)
                operands.append(arr)
        return pl.pallas_call(
            kernel,
            out_shape=jax.ShapeDtypeStruct((b_pad, out_p_last), jnp.bfloat16),
            grid=(n_tiles,),
            in_specs=in_specs,
            out_specs=pl.BlockSpec((tb, out_p_last), lambda i: (i, 0)),
            compiler_params=pltpu.CompilerParams(
                dimension_semantics=("parallel",),
                vmem_limit_bytes=vmem_limit),
        )(*operands)

    try:
        out = _call(True)
    except Exception:
        out = _call(False)   # fall back to default double-buffering of weights

    out = out[:B, :out_last].astype(jnp.float32)
    return out.reshape(*orig_shape[:-1], out_last)


# ------------------------------ Reference -------------------------------------

def _reference_forward(x, raw_params, *, sigma=1.0):
    """Pure-JAX f32 reference matching the PyTorch forward exactly."""
    orig = x.shape
    h = x.reshape(-1, orig[-1]).astype(jnp.float32)
    for p in raw_params:
        base = (h * jax.nn.sigmoid(h)) @ p["base_weight"].T
        k = jnp.exp(-jnp.abs(h[:, :, None] - p["grid"][None, :, :]) / sigma)   # (B, in, G)
        scaled = p["spline_weight"] * p["spline_scaler"][:, :, None]           # (out, in, G)
        spline = k.reshape(h.shape[0], -1) @ scaled.reshape(scaled.shape[0], -1).T
        h = base + spline
    return h.reshape(*orig[:-1], h.shape[-1])


# --------------------------------- Main ----------------------------------------

if __name__ == "__main__":
    layers_hidden = [32, 64, 16]     # in -> hidden -> out
    batch = 16
    grid_size = 5
    sigma = 1.0

    key = jax.random.PRNGKey(0)
    key, kx = jax.random.split(key)
    x = jax.random.normal(kx, (batch, layers_hidden[0]), jnp.float32)

    raw_params = init_kan_params(key, layers_hidden, grid_size=grid_size)
    packed = [pack_kan_layer(p, sigma=sigma) for p in raw_params]

    out = laplacian_kan_forward(x, packed, sigma=sigma)
    out = jax.block_until_ready(out)

    ref = _reference_forward(x, raw_params, sigma=sigma)
    # bf16 matmul operands / bf16 Laplacian features (v6e+) / bf16 output store with f32
    # accumulation => loosened tolerance vs the f32 reference.
    np.testing.assert_allclose(np.asarray(out), np.asarray(ref), rtol=3e-2, atol=3e-2)

    # TODO(synk): update_grid / regularization_loss are training-time utilities
    # (torch.sort-based grid adaptation, entropy regularizer), not part of the forward
    # pass; they are intentionally not implemented as kernels.
    print("KERNEL_OK")
</pallas_src>

<mosaic_0001>
module attributes {stable_mosaic.version = 11 : i64} {
  func.func @_kan_chain_kernel(%arg0: i32, %arg1: memref<16x128xf32, #tpu.memory_space<vmem>>, %arg2: memref<2x128xf32, #tpu.memory_space<vmem>>, %arg3: memref<384x128xbf16, #tpu.memory_space<vmem>>, %arg4: memref<3x128xf32, #tpu.memory_space<vmem>>, %arg5: memref<512x128xbf16, #tpu.memory_space<vmem>>, %arg6: memref<16x128xbf16, #tpu.memory_space<vmem>>) attributes {dimension_semantics = [#tpu.dimension_semantics<parallel>], iteration_bounds = array<i64: 1>, scalar_prefetch = 0 : i64, scratch_operands = 0 : i64, tpu.core_type = #tpu.core_type<tc>, window_params = [{transform_indices = @transform_0, window_bounds = array<i64: 16, 128>}, {pipeline_mode = #tpu.pipeline_mode<synchronous>, transform_indices = @transform_1, window_bounds = array<i64: 2, 128>}, {pipeline_mode = #tpu.pipeline_mode<synchronous>, transform_indices = @transform_2, window_bounds = array<i64: 384, 128>}, {pipeline_mode = #tpu.pipeline_mode<synchronous>, transform_indices = @transform_3, window_bounds = array<i64: 3, 128>}, {pipeline_mode = #tpu.pipeline_mode<synchronous>, transform_indices = @transform_4, window_bounds = array<i64: 512, 128>}, {transform_indices = @transform_5, window_bounds = array<i64: 16, 128>}]} {
    %c0 = arith.constant 0 : index
    %c0_0 = arith.constant 0 : index
    %0 = vector.load %arg1[%c0, %c0_0] : memref<16x128xf32, #tpu.memory_space<vmem>>, vector<16x128xf32>
    %1 = arith.negf %0 : vector<16x128xf32>
    %2 = math.exp %1 : vector<16x128xf32>
    %cst = arith.constant 1.000000e+00 : f32
    %3 = vector.broadcast %cst : f32 to vector<16x128xf32>
    %4 = arith.addf %3, %2 : vector<16x128xf32>
    %5 = arith.divf %3, %4 : vector<16x128xf32>
    %6 = arith.mulf %0, %5 : vector<16x128xf32>
    %7 = arith.truncf %6 : vector<16x128xf32> to vector<16x128xbf16>
    %c0_1 = arith.constant 0 : index
    %c0_2 = arith.constant 0 : index
    %8 = vector.load %arg3[%c0_1, %c0_2] : memref<384x128xbf16, #tpu.memory_space<vmem>>, vector<128x128xbf16>
    %cst_3 = arith.constant dense<0.000000e+00> : vector<16x128xf32>
    %9 = tpu.matmul %7, %8, %cst_3 {dimension_numbers = #tpu.dot_dimension_numbers<[1], [0], [0], [1], [0, 0, 1, 1], [], []>} : vector<16x128xbf16>, vector<128x128xbf16>, vector<16x128xf32> -> vector<16x128xf32>
    %c32_i32 = arith.constant 32 : i32
    %10 = tpu.dynamic_rotate %0 by %c32_i32 dim 1 : vector<16x128xf32>, i32 -> vector<16x128xf32>
    %11 = arith.addf %0, %10 : vector<16x128xf32>
    %c64_i32 = arith.constant 64 : i32
    %12 = tpu.dynamic_rotate %11 by %c64_i32 dim 1 : vector<16x128xf32>, i32 -> vector<16x128xf32>
    %13 = arith.addf %11, %12 : vector<16x128xf32>
    %14 = arith.truncf %13 : vector<16x128xf32> to vector<16x128xbf16>
    %c0_4 = arith.constant 0 : index
    %c0_5 = arith.constant 0 : index
    %15 = vector.load %arg2[%c0_4, %c0_5] : memref<2x128xf32, #tpu.memory_space<vmem>>, vector<1x128xf32>
    %16 = arith.truncf %15 : vector<1x128xf32> to vector<1x128xbf16>
    %17 = vector.broadcast %16 : vector<1x128xbf16> to vector<16x128xbf16>
    %18 = arith.subf %14, %17 : vector<16x128xbf16>
    %19 = math.absf %18 : vector<16x128xbf16>
    %cst_6 = arith.constant 0.000000e+00 : bf16
    %20 = vector.broadcast %cst_6 : bf16 to vector<16x128xbf16>
    %21 = arith.subf %20, %19 : vector<16x128xbf16>
    %22 = math.exp %21 : vector<16x128xbf16>
    %c128 = arith.constant 128 : index
    %c0_7 = arith.constant 0 : index
    %23 = vector.load %arg3[%c128, %c0_7] : memref<384x128xbf16, #tpu.memory_space<vmem>>, vector<128x128xbf16>
    %cst_8 = arith.constant dense<0.000000e+00> : vector<16x128xf32>
    %24 = tpu.matmul %22, %23, %cst_8 {dimension_numbers = #tpu.dot_dimension_numbers<[1], [0], [0], [1], [0, 0, 1, 1], [], []>} : vector<16x128xbf16>, vector<128x128xbf16>, vector<16x128xf32> -> vector<16x128xf32>
    %25 = arith.addf %9, %24 : vector<16x128xf32>
    %c1 = arith.constant 1 : index
    %c0_9 = arith.constant 0 : index
    %26 = vector.load %arg2[%c1, %c0_9] : memref<2x128xf32, #tpu.memory_space<vmem>>, vector<1x128xf32>
    %27 = arith.truncf %26 : vector<1x128xf32> to vector<1x128xbf16>
    %28 = vector.broadcast %27 : vector<1x128xbf16> to vector<16x128xbf16>
    %29 = arith.subf %14, %28 : vector<16x128xbf16>
    %30 = math.absf %29 : vector<16x128xbf16>
    %cst_10 = arith.constant 0.000000e+00 : bf16
    %31 = vector.broadcast %cst_10 : bf16 to vector<16x128xbf16>
    %32 = arith.subf %31, %30 : vector<16x128xbf16>
    %33 = math.exp %32 : vector<16x128xbf16>
    %c256 = arith.constant 256 : index
    %c0_11 = arith.constant 0 : index
    %34 = vector.load %arg3[%c256, %c0_11] : memref<384x128xbf16, #tpu.memory_space<vmem>>, vector<128x128xbf16>
    %cst_12 = arith.constant dense<0.000000e+00> : vector<16x128xf32>
    %35 = tpu.matmul %33, %34, %cst_12 {dimension_numbers = #tpu.dot_dimension_numbers<[1], [0], [0], [1], [0, 0, 1, 1], [], []>} : vector<16x128xbf16>, vector<128x128xbf16>, vector<16x128xf32> -> vector<16x128xf32>
    %36 = arith.addf %25, %35 : vector<16x128xf32>
    %37 = arith.negf %36 : vector<16x128xf32>
    %38 = math.exp %37 : vector<16x128xf32>
    %cst_13 = arith.constant 1.000000e+00 : f32
    %39 = vector.broadcast %cst_13 : f32 to vector<16x128xf32>
    %40 = arith.addf %39, %38 : vector<16x128xf32>
    %41 = arith.divf %39, %40 : vector<16x128xf32>
    %42 = arith.mulf %36, %41 : vector<16x128xf32>
    %43 = arith.truncf %42 : vector<16x128xf32> to vector<16x128xbf16>
    %c0_14 = arith.constant 0 : index
    %c0_15 = arith.constant 0 : index
    %44 = vector.load %arg5[%c0_14, %c0_15] : memref<512x128xbf16, #tpu.memory_space<vmem>>, vector<128x128xbf16>
    %cst_16 = arith.constant dense<0.000000e+00> : vector<16x128xf32>
    %45 = tpu.matmul %43, %44, %cst_16 {dimension_numbers = #tpu.dot_dimension_numbers<[1], [0], [0], [1], [0, 0, 1, 1], [], []>} : vector<16x128xbf16>, vector<128x128xbf16>, vector<16x128xf32> -> vector<16x128xf32>
    %c64_i32_17 = arith.constant 64 : i32
    %46 = tpu.dynamic_rotate %36 by %c64_i32_17 dim 1 : vector<16x128xf32>, i32 -> vector<16x128xf32>
    %47 = arith.addf %36, %46 : vector<16x128xf32>
    %48 = arith.truncf %47 : vector<16x128xf32> to vector<16x128xbf16>
    %c0_18 = arith.constant 0 : index
    %c0_19 = arith.constant 0 : index
    %49 = vector.load %arg4[%c0_18, %c0_19] : memref<3x128xf32, #tpu.memory_space<vmem>>, vector<1x128xf32>
    %50 = arith.truncf %49 : vector<1x128xf32> to vector<1x128xbf16>
    %51 = vector.broadcast %50 : vector<1x128xbf16> to vector<16x128xbf16>
    %52 = arith.subf %48, %51 : vector<16x128xbf16>
    %53 = math.absf %52 : vector<16x128xbf16>
    %cst_20 = arith.constant 0.000000e+00 : bf16
    %54 = vector.broadcast %cst_20 : bf16 to vector<16x128xbf16>
    %55 = arith.subf %54, %53 : vector<16x128xbf16>
    %56 = math.exp %55 : vector<16x128xbf16>
    %c128_21 = arith.constant 128 : index
    %c0_22 = arith.constant 0 : index
    %57 = vector.load %arg5[%c128_21, %c0_22] : memref<512x128xbf16, #tpu.memory_space<vmem>>, vector<128x128xbf16>
    %cst_23 = arith.constant dense<0.000000e+00> : vector<16x128xf32>
    %58 = tpu.matmul %56, %57, %cst_23 {dimension_numbers = #tpu.dot_dimension_numbers<[1], [0], [0], [1], [0, 0, 1, 1], [], []>} : vector<16x128xbf16>, vector<128x128xbf16>, vector<16x128xf32> -> vector<16x128xf32>
    %59 = arith.addf %45, %58 : vector<16x128xf32>
    %c1_24 = arith.constant 1 : index
    %c0_25 = arith.constant 0 : index
    %60 = vector.load %arg4[%c1_24, %c0_25] : memref<3x128xf32, #tpu.memory_space<vmem>>, vector<1x128xf32>
    %61 = arith.truncf %60 : vector<1x128xf32> to vector<1x128xbf16>
    %62 = vector.broadcast %61 : vector<1x128xbf16> to vector<16x128xbf16>
    %63 = arith.subf %48, %62 : vector<16x128xbf16>
    %64 = math.absf %63 : vector<16x128xbf16>
    %cst_26 = arith.constant 0.000000e+00 : bf16
    %65 = vector.broadcast %cst_26 : bf16 to vector<16x128xbf16>
    %66 = arith.subf %65, %64 : vector<16x128xbf16>
    %67 = math.exp %66 : vector<16x128xbf16>
    %c256_27 = arith.constant 256 : index
    %c0_28 = arith.constant 0 : index
    %68 = vector.load %arg5[%c256_27, %c0_28] : memref<512x128xbf16, #tpu.memory_space<vmem>>, vector<128x128xbf16>
    %cst_29 = arith.constant dense<0.000000e+00> : vector<16x128xf32>
    %69 = tpu.matmul %67, %68, %cst_29 {dimension_numbers = #tpu.dot_dimension_numbers<[1], [0], [0], [1], [0, 0, 1, 1], [], []>} : vector<16x128xbf16>, vector<128x128xbf16>, vector<16x128xf32> -> vector<16x128xf32>
    %70 = arith.addf %59, %69 : vector<16x128xf32>
    %c2 = arith.constant 2 : index
    %c0_30 = arith.constant 0 : index
    %71 = vector.load %arg4[%c2, %c0_30] : memref<3x128xf32, #tpu.memory_space<vmem>>, vector<1x128xf32>
    %72 = arith.truncf %71 : vector<1x128xf32> to vector<1x128xbf16>
    %73 = vector.broadcast %72 : vector<1x128xbf16> to vector<16x128xbf16>
    %74 = arith.subf %48, %73 : vector<16x128xbf16>
    %75 = math.absf %74 : vector<16x128xbf16>
    %cst_31 = arith.constant 0.000000e+00 : bf16
    %76 = vector.broadcast %cst_31 : bf16 to vector<16x128xbf16>
    %77 = arith.subf %76, %75 : vector<16x128xbf16>
    %78 = math.exp %77 : vector<16x128xbf16>
    %c384 = arith.constant 384 : index
    %c0_32 = arith.constant 0 : index
    %79 = vector.load %arg5[%c384, %c0_32] : memref<512x128xbf16, #tpu.memory_space<vmem>>, vector<128x128xbf16>
    %cst_33 = arith.constant dense<0.000000e+00> : vector<16x128xf32>
    %80 = tpu.matmul %78, %79, %cst_33 {dimension_numbers = #tpu.dot_dimension_numbers<[1], [0], [0], [1], [0, 0, 1, 1], [], []>} : vector<16x128xbf16>, vector<128x128xbf16>, vector<16x128xf32> -> vector<16x128xf32>
    %81 = arith.addf %70, %80 : vector<16x128xf32>
    %82 = arith.truncf %81 : vector<16x128xf32> to vector<16x128xbf16>
    %c0_34 = arith.constant 0 : index
    %c0_35 = arith.constant 0 : index
    %83 = vector.load %arg6[%c0_34, %c0_35] : memref<16x128xbf16, #tpu.memory_space<vmem>>, vector<16x128xbf16>
    tpu.vector_store %arg6[%c0_34, %c0_35], %82 {strides = array<i32>} : memref<16x128xbf16, #tpu.memory_space<vmem>>, vector<16x128xbf16>,
    return
  }
  func.func @transform_0(%arg0: i32) -> (i32, i32) {
    %c0_i32 = arith.constant 0 : i32
    %c0_i32_0 = arith.constant 0 : i32
    return %arg0, %c0_i32 : i32, i32
  }
  func.func @transform_1(%arg0: i32) -> (i32, i32) {
    %c0_i32 = arith.constant 0 : i32
    %c0_i32_0 = arith.constant 0 : i32
    %c0_i32_1 = arith.constant 0 : i32
    return %c0_i32, %c0_i32_0 : i32, i32
  }
  func.func @transform_2(%arg0: i32) -> (i32, i32) {
    %c0_i32 = arith.constant 0 : i32
    %c0_i32_0 = arith.constant 0 : i32
    %c0_i32_1 = arith.constant 0 : i32
    return %c0_i32, %c0_i32_0 : i32, i32
  }
  func.func @transform_3(%arg0: i32) -> (i32, i32) {
    %c0_i32 = arith.constant 0 : i32
    %c0_i32_0 = arith.constant 0 : i32
    %c0_i32_1 = arith.constant 0 : i32
    return %c0_i32, %c0_i32_0 : i32, i32
  }
  func.func @transform_4(%arg0: i32) -> (i32, i32) {
    %c0_i32 = arith.constant 0 : i32
    %c0_i32_0 = arith.constant 0 : i32
    %c0_i32_1 = arith.constant 0 : i32
    return %c0_i32, %c0_i32_0 : i32, i32
  }
  func.func @transform_5(%arg0: i32) -> (i32, i32) {
    %c0_i32 = arith.constant 0 : i32
    %c0_i32_0 = arith.constant 0 : i32
    return %arg0, %c0_i32 : i32, i32
  }
}

module attributes {stable_mosaic.version = 11 : i64} {
  func.func @_kan_chain_kernel(%arg0: i32, %arg1: memref<16x128xf32, #tpu.memory_space<vmem>>, %arg2: memref<2x128xf32, #tpu.memory_space<vmem>>, %arg3: memref<384x128xbf16, #tpu.memory_space<vmem>>, %arg4: memref<3x128xf32, #tpu.memory_space<vmem>>, %arg5: memref<512x128xbf16, #tpu.memory_space<vmem>>, %arg6: memref<16x128xbf16, #tpu.memory_space<vmem>>) attributes {dimension_semantics = [#tpu.dimension_semantics<parallel>], iteration_bounds = array<i64: 1>, scalar_prefetch = 0 : i64, scratch_operands = 0 : i64, tpu.core_type = #tpu.core_type<tc>, window_params = [{transform_indices = @transform_0, window_bounds = array<i64: 16, 128>}, {pipeline_mode = #tpu.pipeline_mode<synchronous>, transform_indices = @transform_1, window_bounds = array<i64: 2, 128>}, {pipeline_mode = #tpu.pipeline_mode<synchronous>, transform_indices = @transform_2, window_bounds = array<i64: 384, 128>}, {pipeline_mode = #tpu.pipeline_mode<synchronous>, transform_indices = @transform_3, window_bounds = array<i64: 3, 128>}, {pipeline_mode = #tpu.pipeline_mode<synchronous>, transform_indices = @transform_4, window_bounds = array<i64: 512, 128>}, {transform_indices = @transform_5, window_bounds = array<i64: 16, 128>}]} {
    %c0 = arith.constant 0 : index
    %c0_0 = arith.constant 0 : index
    %0 = vector.load %arg1[%c0, %c0_0] : memref<16x128xf32, #tpu.memory_space<vmem>>, vector<16x128xf32>
    %1 = arith.negf %0 : vector<16x128xf32>
    %2 = math.exp %1 : vector<16x128xf32>
    %cst = arith.constant 1.000000e+00 : f32
    %3 = vector.broadcast %cst : f32 to vector<16x128xf32>
    %4 = arith.addf %3, %2 : vector<16x128xf32>
    %5 = arith.divf %3, %4 : vector<16x128xf32>
    %6 = arith.mulf %0, %5 : vector<16x128xf32>
    %7 = arith.truncf %6 : vector<16x128xf32> to vector<16x128xbf16>
    %c0_1 = arith.constant 0 : index
    %c0_2 = arith.constant 0 : index
    %8 = vector.load %arg3[%c0_1, %c0_2] : memref<384x128xbf16, #tpu.memory_space<vmem>>, vector<128x128xbf16>
    %cst_3 = arith.constant dense<0.000000e+00> : vector<16x128xf32>
    %9 = tpu.matmul %7, %8, %cst_3 {dimension_numbers = #tpu.dot_dimension_numbers<[1], [0], [0], [1], [0, 0, 1, 1], [], []>} : vector<16x128xbf16>, vector<128x128xbf16>, vector<16x128xf32> -> vector<16x128xf32>
    %c32_i32 = arith.constant 32 : i32
    %10 = tpu.dynamic_rotate %0 by %c32_i32 dim 1 : vector<16x128xf32>, i32 -> vector<16x128xf32>
    %11 = arith.addf %0, %10 : vector<16x128xf32>
    %c64_i32 = arith.constant 64 : i32
    %12 = tpu.dynamic_rotate %11 by %c64_i32 dim 1 : vector<16x128xf32>, i32 -> vector<16x128xf32>
    %13 = arith.addf %11, %12 : vector<16x128xf32>
    %14 = arith.truncf %13 : vector<16x128xf32> to vector<16x128xbf16>
    %c0_4 = arith.constant 0 : index
    %c0_5 = arith.constant 0 : index
    %15 = vector.load %arg2[%c0_4, %c0_5] : memref<2x128xf32, #tpu.memory_space<vmem>>, vector<1x128xf32>
    %16 = arith.truncf %15 : vector<1x128xf32> to vector<1x128xbf16>
    %17 = vector.broadcast %16 : vector<1x128xbf16> to vector<16x128xbf16>
    %18 = arith.subf %14, %17 : vector<16x128xbf16>
    %19 = math.absf %18 : vector<16x128xbf16>
    %cst_6 = arith.constant 0.000000e+00 : bf16
    %20 = vector.broadcast %cst_6 : bf16 to vector<16x128xbf16>
    %21 = arith.subf %20, %19 : vector<16x128xbf16>
    %22 = math.exp %21 : vector<16x128xbf16>
    %c128 = arith.constant 128 : index
    %c0_7 = arith.constant 0 : index
    %23 = vector.load %arg3[%c128, %c0_7] : memref<384x128xbf16, #tpu.memory_space<vmem>>, vector<128x128xbf16>
    %cst_8 = arith.constant dense<0.000000e+00> : vector<16x128xf32>
    %24 = tpu.matmul %22, %23, %cst_8 {dimension_numbers = #tpu.dot_dimension_numbers<[1], [0], [0], [1], [0, 0, 1, 1], [], []>} : vector<16x128xbf16>, vector<128x128xbf16>, vector<16x128xf32> -> vector<16x128xf32>
    %25 = arith.addf %9, %24 : vector<16x128xf32>
    %c1 = arith.constant 1 : index
    %c0_9 = arith.constant 0 : index
    %26 = vector.load %arg2[%c1, %c0_9] : memref<2x128xf32, #tpu.memory_space<vmem>>, vector<1x128xf32>
    %27 = arith.truncf %26 : vector<1x128xf32> to vector<1x128xbf16>
    %28 = vector.broadcast %27 : vector<1x128xbf16> to vector<16x128xbf16>
    %29 = arith.subf %14, %28 : vector<16x128xbf16>
    %30 = math.absf %29 : vector<16x128xbf16>
    %cst_10 = arith.constant 0.000000e+00 : bf16
    %31 = vector.broadcast %cst_10 : bf16 to vector<16x128xbf16>
    %32 = arith.subf %31, %30 : vector<16x128xbf16>
    %33 = math.exp %32 : vector<16x128xbf16>
    %c256 = arith.constant 256 : index
    %c0_11 = arith.constant 0 : index
    %34 = vector.load %arg3[%c256, %c0_11] : memref<384x128xbf16, #tpu.memory_space<vmem>>, vector<128x128xbf16>
    %cst_12 = arith.constant dense<0.000000e+00> : vector<16x128xf32>
    %35 = tpu.matmul %33, %34, %cst_12 {dimension_numbers = #tpu.dot_dimension_numbers<[1], [0], [0], [1], [0, 0, 1, 1], [], []>} : vector<16x128xbf16>, vector<128x128xbf16>, vector<16x128xf32> -> vector<16x128xf32>
    %36 = arith.addf %25, %35 : vector<16x128xf32>
    %37 = arith.negf %36 : vector<16x128xf32>
    %38 = math.exp %37 : vector<16x128xf32>
    %cst_13 = arith.constant 1.000000e+00 : f32
    %39 = vector.broadcast %cst_13 : f32 to vector<16x128xf32>
    %40 = arith.addf %39, %38 : vector<16x128xf32>
    %41 = arith.divf %39, %40 : vector<16x128xf32>
    %42 = arith.mulf %36, %41 : vector<16x128xf32>
    %43 = arith.truncf %42 : vector<16x128xf32> to vector<16x128xbf16>
    %c0_14 = arith.constant 0 : index
    %c0_15 = arith.constant 0 : index
    %44 = vector.load %arg5[%c0_14, %c0_15] : memref<512x128xbf16, #tpu.memory_space<vmem>>, vector<128x128xbf16>
    %cst_16 = arith.constant dense<0.000000e+00> : vector<16x128xf32>
    %45 = tpu.matmul %43, %44, %cst_16 {dimension_numbers = #tpu.dot_dimension_numbers<[1], [0], [0], [1], [0, 0, 1, 1], [], []>} : vector<16x128xbf16>, vector<128x128xbf16>, vector<16x128xf32> -> vector<16x128xf32>
    %c64_i32_17 = arith.constant 64 : i32
    %46 = tpu.dynamic_rotate %36 by %c64_i32_17 dim 1 : vector<16x128xf32>, i32 -> vector<16x128xf32>
    %47 = arith.addf %36, %46 : vector<16x128xf32>
    %48 = arith.truncf %47 : vector<16x128xf32> to vector<16x128xbf16>
    %c0_18 = arith.constant 0 : index
    %c0_19 = arith.constant 0 : index
    %49 = vector.load %arg4[%c0_18, %c0_19] : memref<3x128xf32, #tpu.memory_space<vmem>>, vector<1x128xf32>
    %50 = arith.truncf %49 : vector<1x128xf32> to vector<1x128xbf16>
    %51 = vector.broadcast %50 : vector<1x128xbf16> to vector<16x128xbf16>
    %52 = arith.subf %48, %51 : vector<16x128xbf16>
    %53 = math.absf %52 : vector<16x128xbf16>
    %cst_20 = arith.constant 0.000000e+00 : bf16
    %54 = vector.broadcast %cst_20 : bf16 to vector<16x128xbf16>
    %55 = arith.subf %54, %53 : vector<16x128xbf16>
    %56 = math.exp %55 : vector<16x128xbf16>
    %c128_21 = arith.constant 128 : index
    %c0_22 = arith.constant 0 : index
    %57 = vector.load %arg5[%c128_21, %c0_22] : memref<512x128xbf16, #tpu.memory_space<vmem>>, vector<128x128xbf16>
    %cst_23 = arith.constant dense<0.000000e+00> : vector<16x128xf32>
    %58 = tpu.matmul %56, %57, %cst_23 {dimension_numbers = #tpu.dot_dimension_numbers<[1], [0], [0], [1], [0, 0, 1, 1], [], []>} : vector<16x128xbf16>, vector<128x128xbf16>, vector<16x128xf32> -> vector<16x128xf32>
    %59 = arith.addf %45, %58 : vector<16x128xf32>
    %c1_24 = arith.constant 1 : index
    %c0_25 = arith.constant 0 : index
    %60 = vector.load %arg4[%c1_24, %c0_25] : memref<3x128xf32, #tpu.memory_space<vmem>>, vector<1x128xf32>
    %61 = arith.truncf %60 : vector<1x128xf32> to vector<1x128xbf16>
    %62 = vector.broadcast %61 : vector<1x128xbf16> to vector<16x128xbf16>
    %63 = arith.subf %48, %62 : vector<16x128xbf16>
    %64 = math.absf %63 : vector<16x128xbf16>
    %cst_26 = arith.constant 0.000000e+00 : bf16
    %65 = vector.broadcast %cst_26 : bf16 to vector<16x128xbf16>
    %66 = arith.subf %65, %64 : vector<16x128xbf16>
    %67 = math.exp %66 : vector<16x128xbf16>
    %c256_27 = arith.constant 256 : index
    %c0_28 = arith.constant 0 : index
    %68 = vector.load %arg5[%c256_27, %c0_28] : memref<512x128xbf16, #tpu.memory_space<vmem>>, vector<128x128xbf16>
    %cst_29 = arith.constant dense<0.000000e+00> : vector<16x128xf32>
    %69 = tpu.matmul %67, %68, %cst_29 {dimension_numbers = #tpu.dot_dimension_numbers<[1], [0], [0], [1], [0, 0, 1, 1], [], []>} : vector<16x128xbf16>, vector<128x128xbf16>, vector<16x128xf32> -> vector<16x128xf32>
    %70 = arith.addf %59, %69 : vector<16x128xf32>
    %c2 = arith.constant 2 : index
    %c0_30 = arith.constant 0 : index
    %71 = vector.load %arg4[%c2, %c0_30] : memref<3x128xf32, #tpu.memory_space<vmem>>, vector<1x128xf32>
    %72 = arith.truncf %71 : vector<1x128xf32> to vector<1x128xbf16>
    %73 = vector.broadcast %72 : vector<1x128xbf16> to vector<16x128xbf16>
    %74 = arith.subf %48, %73 : vector<16x128xbf16>
    %75 = math.absf %74 : vector<16x128xbf16>
    %cst_31 = arith.constant 0.000000e+00 : bf16
    %76 = vector.broadcast %cst_31 : bf16 to vector<16x128xbf16>
    %77 = arith.subf %76, %75 : vector<16x128xbf16>
    %78 = math.exp %77 : vector<16x128xbf16>
    %c384 = arith.constant 384 : index
    %c0_32 = arith.constant 0 : index
    %79 = vector.load %arg5[%c384, %c0_32] : memref<512x128xbf16, #tpu.memory_space<vmem>>, vector<128x128xbf16>
    %cst_33 = arith.constant dense<0.000000e+00> : vector<16x128xf32>
    %80 = tpu.matmul %78, %79, %cst_33 {dimension_numbers = #tpu.dot_dimension_numbers<[1], [0], [0], [1], [0, 0, 1, 1], [], []>} : vector<16x128xbf16>, vector<128x128xbf16>, vector<16x128xf32> -> vector<16x128xf32>
    %81 = arith.addf %70, %80 : vector<16x128xf32>
    %82 = arith.truncf %81 : vector<16x128xf32> to vector<16x128xbf16>
    %c0_34 = arith.constant 0 : index
    %c0_35 = arith.constant 0 : index
    %83 = vector.load %arg6[%c0_34, %c0_35] : memref<16x128xbf16, #tpu.memory_space<vmem>>, vector<16x128xbf16>
    tpu.vector_store %arg6[%c0_34, %c0_35], %82 {strides = array<i32>} : memref<16x128xbf16, #tpu.memory_space<vmem>>, vector<16x128xbf16>,
    return
  }
  func.func @transform_0(%arg0: i32) -> (i32, i32) {
    %c0_i32 = arith.constant 0 : i32
    %c0_i32_0 = arith.constant 0 : i32
    return %arg0, %c0_i32 : i32, i32
  }
  func.func @transform_1(%arg0: i32) -> (i32, i32) {
    %c0_i32 = arith.constant 0 : i32
    %c0_i32_0 = arith.constant 0 : i32
    %c0_i32_1 = arith.constant 0 : i32
    return %c0_i32, %c0_i32_0 : i32, i32
  }
  func.func @transform_2(%arg0: i32) -> (i32, i32) {
    %c0_i32 = arith.constant 0 : i32
    %c0_i32_0 = arith.constant 0 : i32
    %c0_i32_1 = arith.constant 0 : i32
    return %c0_i32, %c0_i32_0 : i32, i32
  }
  func.func @transform_3(%arg0: i32) -> (i32, i32) {
    %c0_i32 = arith.constant 0 : i32
    %c0_i32_0 = arith.constant 0 : i32
    %c0_i32_1 = arith.constant 0 : i32
    return %c0_i32, %c0_i32_0 : i32, i32
  }
  func.func @transform_4(%arg0: i32) -> (i32, i32) {
    %c0_i32 = arith.constant 0 : i32
    %c0_i32_0 = arith.constant 0 : i32
    %c0_i32_1 = arith.constant 0 : i32
    return %c0_i32, %c0_i32_0 : i32, i32
  }
  func.func @transform_5(%arg0: i32) -> (i32, i32) {
    %c0_i32 = arith.constant 0 : i32
    %c0_i32_0 = arith.constant 0 : i32
    return %arg0, %c0_i32 : i32, i32
  }
}

</mosaic_0001>

<bundles_post_ra>
// kernel: tpu_custom_call.1
= control target key start
LH: loop header
LB: loop body
LE: loop exit
PB: predicated region body
PF: predicated region fallthrough
CT: control target
= control target key end

     0   :  { %10 = vsyncpa [#allocation3], 0  ;;  %s1626_s0 = inlined_call_operand.hbm [shape: f32[16,128], index: 0, kind: input, shape index: {}]   ;;  %s1627_s1 = inlined_call_operand.hbm [shape: f32[2,128], index: 1, kind: input, shape index: {}]   ;;  %s1628_s2 = inlined_call_operand.hbm [shape: bf16[384,128], index: 2, kind: input, shape index: {}]   ;;  %s1629_s3 = inlined_call_operand.vmem [shape: f32[3,128], index: 3, kind: input, shape index: {}]   ;;  %s1630_s4 = inlined_call_operand.hbm [shape: bf16[512,128], index: 4, kind: input, shape index: {}]   ;;  %s1631_s5 = inlined_call_operand.hbm [shape: bf16[16,128], index: 5, kind: output, shape index: {}]  }
   0x1   :  { %11 = vsyncpa [#allocation6], 0 }
   0x2   :  { %12 = vsyncpa [#allocation9], 0 }
   0x3   :  { %13 = vsyncpa [#allocation4], 0  ;;  %s1446_s18 = smov [#allocation5]   ;;  %s1447_s20 = smov [#allocation2]  }
   0x4   :  { %s32_s19 = sshll.u32 %s1446_s18, 4  ;;  %s19_s21 = sshll.u32 %s1447_s20, 4  ;;  %s33_s19 = int_to_ptr.vmem [resolvable:$true] %s32_s19  ;;  %s20_s21 = int_to_ptr.vmem [resolvable:$true] %s19_s21 }
   0x5   :  { %s1346_s22 = scalar_lea.vmem %s33_s19, 32  ;;  %p1351_p1 = scmp.lt.s32.totalorder %s33_s19, %s33_s19 }
   0x6   :  { %p1347_p0 = scmp.ne.s32.totalorder %s33_s19, %s1346_s22  ;;  %p1352_p2 = scmp.lt.s32.totalorder %s1346_s22, %s1346_s22 }
   0x8   :  { %p1353_p3 = por %p1352_p2, %p1351_p1 }
   0xa   :  { %p1354_p4 = pnand %p1353_p3, %p1347_p0 }
   0xc   :  { %1357 = shalt.err (!%p1354_p4)
}
   0xd   :  { %35 = dma.hbm_to_vmem [thread:$0]  %s1627_s1, 32, %s33_s19, [#allocation6]  }
   0xe   :  { %s1366_s25 = scalar_lea.vmem %s20_s21, 256  ;;  %p1371_p6 = scmp.lt.s32.totalorder %s20_s21, %s20_s21 }
   0xf   :  { %p1367_p5 = scmp.ne.s32.totalorder %s20_s21, %s1366_s25  ;;  %p1372_p7 = scmp.lt.s32.totalorder %s1366_s25, %s1366_s25 }
  0x11   :  { %p1373_p8 = por %p1372_p7, %p1371_p6 }
  0x13   :  { %p1374_p9 = pnand %p1373_p8, %p1367_p5 }
  0x15   :  { %1377 = shalt.err (!%p1374_p9)
}
  0x16   :  { %s1448_s26 = smov 128   ;;  %s1449_s27 = smov 8  }
  0x17   :  { %25 = dma.hbm_to_vmem [thread:$0]  %s1626_s0, 256, %s20_s21, [#allocation3], %s1448_s26, %s1448_s26, %s1449_s27  }
  0x18   :  { %s1450_s30 = smov [#allocation7]  }
  0x19   :  { %s41_s6 = sshll.u32 %s1450_s30, 4  ;;  %s42_s6 = int_to_ptr.vmem [resolvable:$true] %s41_s6 }
  0x1a   :  { %s1386_s7 = scalar_lea.vmem %s42_s6, 3072  ;;  %p1391_p11 = scmp.lt.s32.totalorder %s42_s6, %s42_s6 }
  0x1b   :  { %p1387_p10 = scmp.ne.s32.totalorder %s42_s6, %s1386_s7  ;;  %p1392_p12 = scmp.lt.s32.totalorder %s1386_s7, %s1386_s7 }
  0x1d   :  { %p1393_p13 = por %p1392_p12, %p1391_p11 }
  0x1f   :  { %p1394_p0 = pnand %p1393_p13, %p1387_p10 }
  0x21   :  { %1397 = shalt.err (!%p1394_p0)
}
  0x22   :  { %s1451_s1 = smov 64   ;;  %s1452_s8 = smov 4  }
  0x23   :  { %47 = dma.hbm_to_vmem [thread:$0]  %s1628_s2, 3072, %s42_s6, [#allocation6], %s1451_s1, %s1451_s1, %s1452_s8  }
  0x24   :  { %s1453_s0 = smov [#allocation8]  }
  0x25   :  { %s55_s11 = sshll.u32 %s1453_s0, 4  ;;  %s56_s11 = int_to_ptr.vmem [resolvable:$true] %s55_s11 }
  0x26   :  { %s1406_s12 = scalar_lea.vmem %s56_s11, 4096  ;;  %p1411_p2 = scmp.lt.s32.totalorder %s56_s11, %s56_s11 }
  0x27   :  { %p1407_p1 = scmp.ne.s32.totalorder %s56_s11, %s1406_s12  ;;  %p1412_p3 = scmp.lt.s32.totalorder %s1406_s12, %s1406_s12 }
  0x29   :  { %p1413_p4 = por %p1412_p3, %p1411_p2 }
  0x2b   :  { %p1414_p5 = pnand %p1413_p4, %p1407_p1 }
  0x2d   :  { %1417 = shalt.err (!%p1414_p5)
}
  0x2e   :  { %61 = dma.hbm_to_vmem [thread:$0]  %s1630_s4, 4096, %s56_s11, [#allocation9], %s1451_s1, %s1451_s1, %s1452_s8  }
  0x2f   :  { %1438 = dma.done.wait [#allocation3], 256  }
  0x30   :  { %1439 = vsyncadd [#allocation3], 4294967040 }
  0x31   :  { %1440 = dma.done.wait [#allocation6], 3104  }
  0x32   :  { %1441 = vsyncadd [#allocation6], 4294964192 }
  0x33   :  { %1442 = dma.done.wait [#allocation9], 4096  }
  0x34   :  { %1443 = vsyncadd [#allocation9], 4294963200  ;;  %v1454_v0 = vmov 0.0   ;;  %v1508_v1 = vld [vmem:[#allocation2] sm:$0xff]  ;;  %s1455_s2 = smov 32   ;;  %v1511_v2 = vld [vmem:[#allocation2 + $0x8] sm:$0xff]  ;;  %v126_v34 = vlaneseq }
  0x35   :  { %1104 = vmatprep.subr.bf16.mxu0 %v1454_v0  ;;  %1124 = vmatprep.subr.bf16.mxu1 %v1454_v0  ;;  %v1256_v3 = vld [vmem:[#allocation7 + $0x78] sm:$0xff]   ;;  %v972_v4 = vmul.f32 -1.442695, %v1508_v1  ;;  %v973_v5 = vmul.f32 -1.442695, %v1511_v2  ;;  %v1258_v7 = vld [vmem:[#allocation7 + $0x70] sm:$0xff]  }
  0x36   :  { %108 = vrot.lane.b32.xlu0 %v1508_v1, %s1455_s2  ;;  %1105 = vmatpush3.bf16.msra.mxu0 %v1256_v3  ;;  %v1257_v6 = vld [vmem:[#allocation7 + $0x38] sm:$0xff]   ;;  %v1259_v8 = vld [vmem:[#allocation7 + $0x30] sm:$0xff]   ;;  %v1260_v11 = vld [vmem:[#allocation7 + $0x68] sm:$0xff]   ;;  %vm1456_vm0 = vmmov 0   ;;  %v127_v37 = vshrl.u32 %v126_v34, 7 }
  0x37   :  { %1106 = vmatprep.subr.bf16.mxu0 %v1454_v0  ;;  %1312 = vpow2.f32 %v972_v4  ;;  %1125 = vmatpush3.bf16.msra.mxu1 %v1257_v6  ;;  %v1261_v13 = vld [vmem:[#allocation7 + $0x28] sm:$0xff]   ;;  %v1262_v16 = vld [vmem:[#allocation7 + $0x60] sm:$0xff]   ;;  %v1264_v20 = vld [vmem:[#allocation7 + $0x58] sm:$0xff]  }
  0x38   :  { %1314 = vpow2.f32 %v973_v5  ;;  %1126 = vmatprep.subr.bf16.mxu1 %v1454_v0  ;;  %v1263_v18 = vld [vmem:[#allocation7 + $0x20] sm:$0xff]   ;;  %v1265_v22 = vld [vmem:[#allocation7 + $0x18] sm:$0xff]   ;;  %v1266_v23 = vld [vmem:[#allocation7 + $0x50] sm:$0xff]   ;;  %1120 = vmatprep.mubr.msk.bf16.mxu0 %vm1456_vm0, %v1454_v0  ;;  %v1544_v40 = vsub.s32 0, %v127_v37 }
  0x39   :  { %v1267_v24 = vld [vmem:[#allocation7 + $0x10] sm:$0xff]   ;;  %1140 = vmatprep.mubr.msk.bf16.mxu1 %vm1456_vm0, %v1454_v0  ;;  %v1268_v25 = vld [vmem:[#allocation7 + $0x48] sm:$0xff]   ;;  %v1270_v28 = vld [vmem:[#allocation7 + $0x40] sm:$0xff]  }
  0x3a   :  { %110 = vrot.lane.b32.xlu0 %v1511_v2, %s1455_s2  ;;  %1107 = vmatpush3.bf16.msra.mxu0 %v1258_v7  ;;  %v1269_v26 = vld [vmem:[#allocation7 + $0x8] sm:$0xff]   ;;  %v1271_v30 = vld [vmem:[#allocation7] sm:$0xff]   ;;  %v121_v35 = vld [vmem:[#allocation5] sm:$0x1] }
  0x3b   :  { %1108 = vmatprep.subr.bf16.mxu0 %v1454_v0  ;;  %1127 = vmatpush3.bf16.msra.mxu1 %v1259_v8  ;;  %v122_v36 = vpack.c.bf16 %v121_v35, %v121_v35  ;;  %v330_v50 = vld [vmem:[#allocation5 + $0x1] sm:$0x1]  ;;  %v1273_v57 = vld [vmem:[#allocation7 + $0xb0] sm:$0xff]   ;;  %v1274_v59 = vld [vmem:[#allocation7 + $0xa8] sm:$0xff]  }
  0x3c   :  { %1128 = vmatprep.subr.bf16.mxu1 %v1454_v0  ;;  %v331_v51 = vpack.c.bf16 %v330_v50, %v330_v50  ;;  %v1272_v54 = vld [vmem:[#allocation7 + $0xb8] sm:$0xff]   ;;  %v1275_v61 = vld [vmem:[#allocation7 + $0xa0] sm:$0xff]   ;;  %v1300_v37 = vld [vmem:[#allocation8 + $0x48] sm:$0xff]  }
  0x3d   :  { %v124_v39 = vpack.i.b16 %v122_v36, %v122_v36  ;;  %v1276_v63 = vld [vmem:[#allocation7 + $0x98] sm:$0xff]   ;;  %v1279_v3 = vld [vmem:[#allocation7 + $0x80] sm:$0xff]   ;;  %v1298_v36 = vld [vmem:[#allocation8 + $0x50] sm:$0xff]  }
  0x3e   :  { %1109 = vmatpush3.bf16.msra.mxu0 %v1260_v11  ;;  %v333_v52 = vpack.i.b16 %v331_v51, %v331_v51  ;;  %v1282_v11 = vld [vmem:[#allocation8 + $0x28] sm:$0xff]   ;;  %v1291_v50 = vld [vmem:[#allocation8 + $0xf0] sm:$0xff]  }
  0x3f   :  { %1129 = vmatpush3.bf16.msra.mxu1 %v1261_v13  ;;  %1110 = vmatprep.subr.bf16.mxu0 %v1454_v0  ;;  %v129_v43 = vrot.slane %v124_v39, %v1544_v40  ;;  %v1284_v13 = vld [vmem:[#allocation8 + $0x18] sm:$0xff]   ;;  %v1293_v51 = vld [vmem:[#allocation8 + $0xe8] sm:$0xff]  }
  0x40   :  { %1130 = vmatprep.subr.bf16.mxu1 %v1454_v0  ;;  %v338_v53 = vrot.slane %v333_v52, %v1544_v40  ;;  %v1295_v52 = vld [vmem:[#allocation8 + $0xe0] sm:$0xff]  }
  0x42   :  { %1111 = vmatpush3.bf16.msra.mxu0 %v1262_v16  ;;  %v1287_v16 = vld [vmem:[#allocation8] sm:$0xff]  }
  0x43   :  { %1131 = vmatpush3.bf16.msra.mxu1 %v1263_v18  ;;  %1112 = vmatprep.subr.bf16.mxu0 %v1454_v0 }
  0x44   :  { %v1313_v9 = vpop.eup %1312  ;;  %1132 = vmatprep.subr.bf16.mxu1 %v1454_v0 }
  0x45   :  { %v1315_v10 = vpop.eup %1314  ;;  %v83_v12 = vadd.f32 1.0, %v1313_v9  ;;  %v1280_v9 = vld [vmem:[#allocation8 + $0x38] sm:$0xff]  }
  0x46   :  { %v84_v14 = vadd.f32 1.0, %v1315_v10  ;;  %1113 = vmatpush3.bf16.msra.mxu0 %v1264_v20  ;;  %v1281_v10 = vld [vmem:[#allocation8 + $0x30] sm:$0xff]  }
  0x47   :  { %1316 = vrcp.f32 %v83_v12  ;;  %1133 = vmatpush3.bf16.msra.mxu1 %v1265_v22  ;;  %1114 = vmatprep.subr.bf16.mxu0 %v1454_v0  ;;  %v1283_v12 = vld [vmem:[#allocation8 + $0x20] sm:$0xff]   ;;  %v1290_v22 = vld [vmem:[#allocation8 + $0x70] sm:$0xff]  }
  0x48   :  { %1318 = vrcp.f32 %v84_v14  ;;  %1134 = vmatprep.subr.bf16.mxu1 %v1454_v0  ;;  %v1285_v14 = vld [vmem:[#allocation8 + $0x10] sm:$0xff]  }
  0x4a   :  { %1115 = vmatpush3.bf16.msra.mxu0 %v1266_v23  ;;  %v1292_v23 = vld [vmem:[#allocation8 + $0x68] sm:$0xff]  }
  0x4b   :  { %1135 = vmatpush3.bf16.msra.mxu1 %v1267_v24  ;;  %1116 = vmatprep.subr.bf16.mxu0 %v1454_v0 }
  0x4c   :  { %1136 = vmatprep.subr.bf16.mxu1 %v1454_v0 }
  0x4e   :  { %1117 = vmatpush3.bf16.msra.mxu0 %v1268_v25 }
  0x4f   :  { %1137 = vmatpush3.bf16.msra.mxu1 %v1269_v26  ;;  %1118 = vmatprep.subr.bf16.mxu0 %v1454_v0 }
  0x50   :  { %1138 = vmatprep.subr.bf16.mxu1 %v1454_v0 }
  0x52   :  { %1119 = vmatpush3.bf16.msra.mxu0 %v1270_v28 }
  0x53   :  { %1139 = vmatpush3.bf16.msra.mxu1 %v1271_v30  ;;  %1144 = vmatprep.subr.bf16.mxu0 %v1454_v0 }
  0x54   :  { %v1317_v27 = vpop.eup %1316  ;;  %1164 = vmatprep.subr.bf16.mxu1 %v1454_v0 }
  0x55   :  { %v1319_v29 = vpop.eup %1318  ;;  %v89_v31 = vmul.f32 %v1317_v27, %v1508_v1  ;;  %v1294_v27 = vld [vmem:[#allocation8 + $0x60] sm:$0xff]  }
  0x56   :  { %v90_v32 = vmul.f32 %v1319_v29, %v1511_v2 }
  0x58   :  { %v91_v33 = vpack.c.bf16 %v90_v32, %v89_v31 }
  0x5a   :  { %1141 = vmatmul.mubr.bf16.vlgmr.msra.gmra.mxu1 %v91_v33  ;;  %v1296_v33 = vld [vmem:[#allocation8 + $0x58] sm:$0xff]  }
  0x5b   :  { %1180 = vmatprep.mubr.msk.bf16.mxu1 %vm1456_vm0, %v1454_v0 }
  0xa8   :  { %v109_v15 = vpop.permute.xlu0 %108 }
  0xa9   :  { %v112_v17 = vadd.f32 %v109_v15, %v1508_v1  ;;  %v1277_v1 = vld [vmem:[#allocation7 + $0x90] sm:$0xff]   ;;  %v1286_v15 = vld [vmem:[#allocation8 + $0x8] sm:$0xff]  }
  0xab   :  { %114 = vrot.lane.b32.xlu1 %v112_v17, %s1451_s1 }
  0xac   :  { %v111_v19 = vpop.permute.xlu0 %110 }
  0xad   :  { %v113_v21 = vadd.f32 %v111_v19, %v1511_v2  ;;  %v1278_v2 = vld [vmem:[#allocation7 + $0x88] sm:$0xff]  }
  0xaf   :  { %116 = vrot.lane.b32.xlu1 %v113_v21, %s1451_s1 }
 0x11a   :  { %v323_v5 = vpop.f32.mrf.mxu1 }
 0x11c   :  { %v1142_v6 = vpop.f32.mrf.mxu1 }
 0x11d   :  { %v115_v38 = vpop.permute.xlu1 %114 }
 0x11e   :  { %v118_v42 = vadd.f32 %v115_v38, %v112_v17  ;;  %v326_v7 = vpop.f32.mrf.mxu1  ;;  %v1288_v17 = vld [vmem:[#allocation8 + $0x78] sm:$0xff]   ;;  %v1302_v38 = vld [vmem:[#allocation8 + $0x40] sm:$0xff]  }
 0x11f   :  { %1165 = vmatpush3.bf16.msra.mxu1 %v1288_v17 }
 0x120   :  { %v1143_v8 = vpop.f32.mrf.mxu1  ;;  %1166 = vmatprep.subr.bf16.mxu1 %v1454_v0 }
 0x121   :  { %v117_v41 = vpop.permute.xlu1 %116 }
 0x122   :  { %v119_v44 = vadd.f32 %v117_v41, %v113_v21 }
 0x123   :  { %1167 = vmatpush3.bf16.msra.mxu1 %v1290_v22 }
 0x124   :  { %v120_v45 = vpack.c.bf16 %v119_v44, %v118_v42  ;;  %1168 = vmatprep.subr.bf16.mxu1 %v1454_v0 }
 0x126   :  { %v130_v46 = vsub.bf16 %v120_v45, %v129_v43  ;;  %v339_v56 = vsub.bf16 %v120_v45, %v338_v53  ;;  %v1297_v53 = vld [vmem:[#allocation8 + $0xd8] sm:$0xff]  }
 0x127   :  { %1169 = vmatpush3.bf16.msra.mxu1 %v1292_v23  ;;  %v1305_v23 = vld [vmem:[#allocation8 + $0xb0] sm:$0xff]  }
 0x128   :  { %v131_v47 = vand.u32 2147450879, %v130_v46  ;;  %v340_v58 = vand.u32 2147450879, %v339_v56  ;;  %1170 = vmatprep.subr.bf16.mxu1 %v1454_v0  ;;  %v1303_v56 = vld [vmem:[#allocation8 + $0xc0] sm:$0xff]  }
 0x12a   :  { %v132_v48 = vsub.bf16 0, %v131_v47  ;;  %v341_v60 = vsub.bf16 0, %v340_v58  ;;  %v821_v58 = vld [vmem:[%s1629_s3 + $0x2] sm:$0x1] }
 0x12b   :  { %1171 = vmatpush3.bf16.msra.mxu1 %v1294_v27 }
 0x12c   :  { %v134_v49 = vmul.bf16 1069105081, %v132_v48  ;;  %v343_v62 = vmul.bf16 1069105081, %v341_v60  ;;  %1172 = vmatprep.subr.bf16.mxu1 %v1454_v0  ;;  %v1289_v48 = vld [vmem:[#allocation8 + $0xf8] sm:$0xff]   ;;  %v822_v60 = vpack.c.bf16 %v821_v58, %v821_v58 }
 0x12e   :  { %1320 = vpow.bf16 %v134_v49 }
 0x12f   :  { %1322 = vpow.bf16 %v343_v62  ;;  %1173 = vmatpush3.bf16.msra.mxu1 %v1296_v33  ;;  %v824_v62 = vpack.i.b16 %v822_v60, %v822_v60 }
 0x130   :  { %1174 = vmatprep.subr.bf16.mxu1 %v1454_v0 }
 0x133   :  { %1175 = vmatpush3.bf16.msra.mxu1 %v1298_v36 }
 0x134   :  { %1176 = vmatprep.subr.bf16.mxu1 %v1454_v0 }
 0x137   :  { %1177 = vmatpush3.bf16.msra.mxu1 %v1300_v37 }
 0x138   :  { %1178 = vmatprep.subr.bf16.mxu1 %v1454_v0 }
 0x13b   :  { %1179 = vmatpush3.bf16.msra.mxu1 %v1302_v38 }
 0x13c   :  { %v1321_v55 = vpop.eup %1320  ;;  %1204 = vmatprep.subr.bf16.mxu1 %v1454_v0 }
 0x13d   :  { %1121 = vmatmul.mubr.bf16.vlgmr.msra.gmra.mxu0 %v1321_v55  ;;  %v1323_v4 = vpop.eup %1322  ;;  %v1301_v55 = vld [vmem:[#allocation8 + $0xc8] sm:$0xff]  }
 0x13e   :  { %1145 = vmatpush3.bf16.msra.mxu0 %v1272_v54  ;;  %1160 = vmatprep.mubr.msk.bf16.mxu0 %vm1456_vm0, %v1454_v0  ;;  %v1299_v54 = vld [vmem:[#allocation8 + $0xd0] sm:$0xff]  }
 0x13f   :  { %1146 = vmatprep.subr.bf16.mxu0 %v1454_v0 }
 0x142   :  { %1147 = vmatpush3.bf16.msra.mxu0 %v1273_v57  ;;  %v490_v57 = vld [vmem:[%s1629_s3] sm:$0x1] }
 0x143   :  { %1148 = vmatprep.subr.bf16.mxu0 %v1454_v0 }
 0x146   :  { %1149 = vmatpush3.bf16.msra.mxu0 %v1274_v59  ;;  %v491_v59 = vpack.c.bf16 %v490_v57, %v490_v57 }
 0x147   :  { %1150 = vmatprep.subr.bf16.mxu0 %v1454_v0 }
 0x14a   :  { %1151 = vmatpush3.bf16.msra.mxu0 %v1275_v61  ;;  %v493_v61 = vpack.i.b16 %v491_v59, %v491_v59 }
 0x14b   :  { %1152 = vmatprep.subr.bf16.mxu0 %v1454_v0 }
 0x14e   :  { %1153 = vmatpush3.bf16.msra.mxu0 %v1276_v63 }
 0x14f   :  { %1154 = vmatprep.subr.bf16.mxu0 %v1454_v0 }
 0x152   :  { %1155 = vmatpush3.bf16.msra.mxu0 %v1277_v1 }
 0x153   :  { %1156 = vmatprep.subr.bf16.mxu0 %v1454_v0 }
 0x156   :  { %1157 = vmatpush3.bf16.msra.mxu0 %v1278_v2 }
 0x157   :  { %1158 = vmatprep.subr.bf16.mxu0 %v1454_v0 }
 0x15a   :  { %1159 = vmatpush3.bf16.msra.mxu0 %v1279_v3  ;;  %v498_v3 = vrot.slane %v493_v61, %v1544_v40 }
 0x15b   :  { %1184 = vmatprep.subr.bf16.mxu0 %v1454_v0 }
 0x15d   :  { %1161 = vmatmul.mubr.bf16.vlgmr.msra.gmra.mxu0 %v1323_v4  ;;  %v829_v4 = vrot.slane %v824_v62, %v1544_v40 }
 0x15e   :  { %1200 = vmatprep.mubr.msk.bf16.mxu0 %vm1456_vm0, %v1454_v0  ;;  %1185 = vmatpush3.bf16.msra.mxu0 %v1280_v9 }
 0x15f   :  { %1186 = vmatprep.subr.bf16.mxu0 %v1454_v0 }
 0x162   :  { %1187 = vmatpush3.bf16.msra.mxu0 %v1281_v10 }
 0x163   :  { %1188 = vmatprep.subr.bf16.mxu0 %v1454_v0 }
 0x166   :  { %1189 = vmatpush3.bf16.msra.mxu0 %v1282_v11 }
 0x167   :  { %1190 = vmatprep.subr.bf16.mxu0 %v1454_v0 }
 0x16a   :  { %1191 = vmatpush3.bf16.msra.mxu0 %v1283_v12 }
 0x16b   :  { %1192 = vmatprep.subr.bf16.mxu0 %v1454_v0 }
 0x16e   :  { %1193 = vmatpush3.bf16.msra.mxu0 %v1284_v13 }
 0x16f   :  { %1194 = vmatprep.subr.bf16.mxu0 %v1454_v0 }
 0x172   :  { %1195 = vmatpush3.bf16.msra.mxu0 %v1285_v14 }
 0x173   :  { %1196 = vmatprep.subr.bf16.mxu0 %v1454_v0 }
 0x176   :  { %1197 = vmatpush3.bf16.msra.mxu0 %v1286_v15  ;;  %v699_v15 = vld [vmem:[%s1629_s3 + $0x1] sm:$0x1]  ;;  %s1457_s3 = smov [#allocation10]  }
 0x177   :  { %1198 = vmatprep.subr.bf16.mxu0 %v1454_v0  ;;  %s958_s20 = sshll.u32 %s1457_s3, 4  ;;  %s959_s20 = int_to_ptr.vmem [resolvable:$true] %s958_s20 }
 0x178   :  { %s1418_s21 = scalar_lea.vmem %s959_s20, 128  ;;  %p1423_p7 = scmp.lt.s32.totalorder %s959_s20, %s959_s20 }
 0x179   :  { %p1419_p6 = scmp.ne.s32.totalorder %s959_s20, %s1418_s21  ;;  %p1424_p8 = scmp.lt.s32.totalorder %s1418_s21, %s1418_s21 }
 0x17a   :  { %1199 = vmatpush3.bf16.msra.mxu0 %v1287_v16  ;;  %v700_v16 = vpack.c.bf16 %v699_v15, %v699_v15 }
 0x17b   :  { %1224 = vmatprep.subr.bf16.mxu0 %v1454_v0  ;;  %p1425_p9 = por %p1424_p8, %p1423_p7 }
 0x17c   :  { %v702_v17 = vpack.i.b16 %v700_v16, %v700_v16 }
 0x17d   :  { %p1426_p10 = pnand %p1425_p9, %p1419_p6 }
 0x1fd   :  { %v234_v18 = vpop.f32.mrf.mxu0 }
 0x1fe   :  { %v324_v24 = vadd.f32 %v323_v5, %v234_v18  ;;  %v707_v18 = vrot.slane %v702_v17, %v1544_v40  ;;  %v1307_v40 = vld [vmem:[#allocation8 + $0xa0] sm:$0xff]  }
 0x1ff   :  { %v1122_v19 = vpop.f32.mrf.mxu0 }
 0x200   :  { %v1304_v19 = vld [vmem:[#allocation8 + $0xb8] sm:$0xff]  }
 0x201   :  { %v237_v20 = vpop.f32.mrf.mxu0 }
 0x202   :  { %v327_v29 = vadd.f32 %v326_v7, %v237_v20 }
 0x203   :  { %v1123_v21 = vpop.f32.mrf.mxu0 }
 0x21d   :  { %v443_v25 = vpop.f32.mrf.mxu0 }
 0x21e   :  { %v1571_v26 = vadd.f32 %v443_v25, %v324_v24  ;;  %v1306_v25 = vld [vmem:[#allocation8 + $0xa8] sm:$0xff]  }
 0x21f   :  { %v1162_v28 = vpop.f32.mrf.mxu0 }
 0x220   :  { %v998_v30 = vmul.f32 -1.442695, %v1571_v26  ;;  %483 = vrot.lane.b32.xlu0 %v1571_v26, %s1451_s1  ;;  %v1308_v28 = vld [vmem:[#allocation8 + $0x98] sm:$0xff]  }
 0x221   :  { %v446_v31 = vpop.f32.mrf.mxu0 }
 0x222   :  { %1324 = vpow2.f32 %v998_v30  ;;  %v1577_v32 = vadd.f32 %v446_v31, %v327_v29  ;;  %v1309_v29 = vld [vmem:[#allocation8 + $0x90] sm:$0xff]   ;;  %v1310_v30 = vld [vmem:[#allocation8 + $0x88] sm:$0xff]   ;;  %v1311_v31 = vld [vmem:[#allocation8 + $0x80] sm:$0xff]  }
 0x223   :  { %v1163_v34 = vpop.f32.mrf.mxu0 }
 0x224   :  { %v999_v35 = vmul.f32 -1.442695, %v1577_v32  ;;  %485 = vrot.lane.b32.xlu1 %v1577_v32, %s1451_s1 }
 0x226   :  { %1326 = vpow2.f32 %v999_v35 }
 0x22f   :  { %v1325_v39 = vpop.eup %1324 }
 0x230   :  { %v458_v41 = vadd.f32 1.0, %v1325_v39 }
 0x232   :  { %1328 = vrcp.f32 %v458_v41 }
 0x233   :  { %v1327_v42 = vpop.eup %1326 }
 0x234   :  { %v459_v43 = vadd.f32 1.0, %v1327_v42 }
 0x236   :  { %1330 = vrcp.f32 %v459_v43 }
 0x23f   :  { %v1329_v44 = vpop.eup %1328 }
 0x240   :  { %v464_v46 = vmul.f32 %v1329_v44, %v1571_v26 }
 0x243   :  { %v1331_v45 = vpop.eup %1330 }
 0x244   :  { %v465_v47 = vmul.f32 %v1331_v45, %v1577_v32 }
 0x246   :  { %v466_v49 = vpack.c.bf16 %v465_v47, %v464_v46 }
 0x248   :  { %1201 = vmatmul.mubr.bf16.vlgmr.msra.gmra.mxu0 %v466_v49 }
 0x249   :  { %1225 = vmatpush3.bf16.msra.mxu0 %v1289_v48  ;;  %1240 = vmatprep.mubr.msk.bf16.mxu0 %vm1456_vm0, %v1454_v0 }
 0x24a   :  { %1226 = vmatprep.subr.bf16.mxu0 %v1454_v0 }
 0x24d   :  { %1227 = vmatpush3.bf16.msra.mxu0 %v1291_v50 }
 0x24e   :  { %1228 = vmatprep.subr.bf16.mxu0 %v1454_v0 }
 0x251   :  { %1229 = vmatpush3.bf16.msra.mxu0 %v1293_v51 }
 0x252   :  { %1230 = vmatprep.subr.bf16.mxu0 %v1454_v0 }
 0x255   :  { %1231 = vmatpush3.bf16.msra.mxu0 %v1295_v52 }
 0x256   :  { %1232 = vmatprep.subr.bf16.mxu0 %v1454_v0 }
 0x259   :  { %1233 = vmatpush3.bf16.msra.mxu0 %v1297_v53 }
 0x25a   :  { %1234 = vmatprep.subr.bf16.mxu0 %v1454_v0 }
 0x25d   :  { %1235 = vmatpush3.bf16.msra.mxu0 %v1299_v54 }
 0x25e   :  { %1236 = vmatprep.subr.bf16.mxu0 %v1454_v0 }
 0x261   :  { %1237 = vmatpush3.bf16.msra.mxu0 %v1301_v55 }
 0x262   :  { %1238 = vmatprep.subr.bf16.mxu0 %v1454_v0 }
 0x265   :  { %1239 = vmatpush3.bf16.msra.mxu0 %v1303_v56 }
 0x292   :  { %v484_v63 = vpop.permute.xlu0 %483 }
 0x293   :  { %v487_v2 = vadd.f32 %v484_v63, %v1571_v26 }
 0x296   :  { %v486_v1 = vpop.permute.xlu1 %485 }
 0x297   :  { %v488_v5 = vadd.f32 %v486_v1, %v1577_v32 }
 0x299   :  { %v489_v6 = vpack.c.bf16 %v488_v5, %v487_v2 }
 0x29b   :  { %v499_v7 = vsub.bf16 %v489_v6, %v498_v3  ;;  %v830_v8 = vsub.bf16 %v489_v6, %v829_v4  ;;  %v708_v22 = vsub.bf16 %v489_v6, %v707_v18 }
 0x29d   :  { %v500_v9 = vand.u32 2147450879, %v499_v7  ;;  %v831_v10 = vand.u32 2147450879, %v830_v8  ;;  %v709_v24 = vand.u32 2147450879, %v708_v22 }
 0x29f   :  { %v501_v11 = vsub.bf16 0, %v500_v9  ;;  %v832_v12 = vsub.bf16 0, %v831_v10  ;;  %v710_v26 = vsub.bf16 0, %v709_v24 }
 0x2a1   :  { %v503_v13 = vmul.bf16 1069105081, %v501_v11  ;;  %v834_v14 = vmul.bf16 1069105081, %v832_v12  ;;  %v712_v27 = vmul.bf16 1069105081, %v710_v26 }
 0x2a3   :  { %1332 = vpow.bf16 %v503_v13 }
 0x2a4   :  { %1334 = vpow.bf16 %v834_v14 }
 0x2a5   :  { %1336 = vpow.bf16 %v712_v27 }
 0x2b1   :  { %v1333_v20 = vpop.eup %1332 }
 0x2b2   :  { %1181 = vmatmul.mubr.bf16.vlgmr.msra.gmra.mxu1 %v1333_v20  ;;  %v1335_v21 = vpop.eup %1334 }
 0x2b3   :  { %1205 = vmatpush3.bf16.msra.mxu1 %v1304_v19  ;;  %1220 = vmatprep.mubr.msk.bf16.mxu1 %vm1456_vm0, %v1454_v0  ;;  %v1337_v32 = vpop.eup %1336 }
 0x2b4   :  { %1241 = vmatmul.mubr.bf16.vlgmr.msra.gmra.mxu0 %v1335_v21  ;;  %1206 = vmatprep.subr.bf16.mxu1 %v1454_v0 }
 0x2b7   :  { %1207 = vmatpush3.bf16.msra.mxu1 %v1305_v23 }
 0x2b8   :  { %1208 = vmatprep.subr.bf16.mxu1 %v1454_v0 }
 0x2bb   :  { %1209 = vmatpush3.bf16.msra.mxu1 %v1306_v25 }
 0x2bc   :  { %1210 = vmatprep.subr.bf16.mxu1 %v1454_v0 }
 0x2bf   :  { %1211 = vmatpush3.bf16.msra.mxu1 %v1307_v40 }
 0x2c0   :  { %1212 = vmatprep.subr.bf16.mxu1 %v1454_v0 }
 0x2c3   :  { %1213 = vmatpush3.bf16.msra.mxu1 %v1308_v28 }
 0x2c4   :  { %1214 = vmatprep.subr.bf16.mxu1 %v1454_v0 }
 0x2c7   :  { %1215 = vmatpush3.bf16.msra.mxu1 %v1309_v29 }
 0x2c8   :  { %1216 = vmatprep.subr.bf16.mxu1 %v1454_v0 }
 0x2cb   :  { %1217 = vmatpush3.bf16.msra.mxu1 %v1310_v30 }
 0x2cc   :  { %1218 = vmatprep.subr.bf16.mxu1 %v1454_v0 }
 0x2cf   :  { %1219 = vmatpush3.bf16.msra.mxu1 %v1311_v31 }
 0x2d2   :  { %1221 = vmatmul.mubr.bf16.vlgmr.msra.gmra.mxu1 %v1337_v32 }
 0x308   :  { %v692_v33 = vpop.f32.mrf.mxu0 }
 0x30a   :  { %v1202_v34 = vpop.f32.mrf.mxu0 }
 0x30c   :  { %v695_v35 = vpop.f32.mrf.mxu0 }
 0x30e   :  { %v1203_v36 = vpop.f32.mrf.mxu0 }
 0x372   :  { %v603_v37 = vpop.f32.mrf.mxu1 }
 0x373   :  { %v693_v47 = vadd.f32 %v692_v33, %v603_v37 }
 0x374   :  { %v934_v38 = vpop.f32.mrf.mxu0  ;;  %v1182_v39 = vpop.f32.mrf.mxu1 }
 0x376   :  { %v1242_v41 = vpop.f32.mrf.mxu0  ;;  %v606_v42 = vpop.f32.mrf.mxu1 }
 0x377   :  { %v696_v49 = vadd.f32 %v695_v35, %v606_v42 }
 0x378   :  { %v937_v43 = vpop.f32.mrf.mxu0  ;;  %v1183_v44 = vpop.f32.mrf.mxu1 }
 0x37a   :  { %v1243_v45 = vpop.f32.mrf.mxu0 }
 0x392   :  { %v812_v46 = vpop.f32.mrf.mxu1 }
 0x393   :  { %v819_v0 = vadd.f32 %v812_v46, %v693_v47 }
 0x394   :  { %v1222_v48 = vpop.f32.mrf.mxu1 }
 0x395   :  { %v941_v53 = vadd.f32 %v934_v38, %v819_v0 }
 0x396   :  { %v815_v50 = vpop.f32.mrf.mxu1 }
 0x397   :  { %v820_v51 = vadd.f32 %v815_v50, %v696_v49 }
 0x398   :  { %v1223_v52 = vpop.f32.mrf.mxu1 }
 0x399   :  { %v942_v54 = vadd.f32 %v937_v43, %v820_v51 }
 0x39b   :  { %v1039_v55 = vpack.c.bf16 %v942_v54, %v941_v53 }
 0x39d   :  { %1040 = vst [vmem:[#allocation10] sm:$0xff] %v1039_v55  }
 0x39e   :  { %1429 = shalt.err (!%p1426_p10)
}
 0x39f   :  { %964 = dma.vmem_to_hbm [thread:$0]  %s959_s20, 128, %s1631_s5, [#allocation4], %s1451_s1, %s1451_s1, %s1452_s8  }
 0x3a0   :  { %1444 = dma.done.wait [#allocation4], 128  }
 0x3a1   :  { %1445 = vsyncadd [#allocation4], 4294967168 }
 0x3a2   :  { %968 = vsyncpa [#allocation3], 1 }
 0x3a3   :  { %969 = vsyncpa [#allocation6], 1 }
 0x3a4   :  { %970 = vsyncpa [#allocation9], 1 }
 0x3a5   :  { %971 = vsyncpa [#allocation4], 1 }

// kernel: tpu_custom_call.1
= control target key start
LH: loop header
LB: loop body
LE: loop exit
PB: predicated region body
PF: predicated region fallthrough
CT: control target
= control target key end

     0   :  { %10 = vsyncpa [#allocation3], 0  ;;  %s1626_s0 = inlined_call_operand.hbm [shape: f32[16,128], index: 0, kind: input, shape index: {}]   ;;  %s1627_s1 = inlined_call_operand.hbm [shape: f32[2,128], index: 1, kind: input, shape index: {}]   ;;  %s1628_s2 = inlined_call_operand.hbm [shape: bf16[384,128], index: 2, kind: input, shape index: {}]   ;;  %s1629_s3 = inlined_call_operand.vmem [shape: f32[3,128], index: 3, kind: input, shape index: {}]   ;;  %s1630_s4 = inlined_call_operand.hbm [shape: bf16[512,128], index: 4, kind: input, shape index: {}]   ;;  %s1631_s5 = inlined_call_operand.hbm [shape: bf16[16,128], index: 5, kind: output, shape index: {}]  }
   0x1   :  { %11 = vsyncpa [#allocation6], 0 }
   0x2   :  { %12 = vsyncpa [#allocation9], 0 }
   0x3   :  { %13 = vsyncpa [#allocation4], 0  ;;  %s1446_s18 = smov [#allocation5]   ;;  %s1447_s20 = smov [#allocation2]  }
   0x4   :  { %s32_s19 = sshll.u32 %s1446_s18, 4  ;;  %s19_s21 = sshll.u32 %s1447_s20, 4  ;;  %s33_s19 = int_to_ptr.vmem [resolvable:$true] %s32_s19  ;;  %s20_s21 = int_to_ptr.vmem [resolvable:$true] %s19_s21 }
   0x5   :  { %s1346_s22 = scalar_lea.vmem %s33_s19, 32  ;;  %p1351_p1 = scmp.lt.s32.totalorder %s33_s19, %s33_s19 }
   0x6   :  { %p1347_p0 = scmp.ne.s32.totalorder %s33_s19, %s1346_s22  ;;  %p1352_p2 = scmp.lt.s32.totalorder %s1346_s22, %s1346_s22 }
   0x8   :  { %p1353_p3 = por %p1352_p2, %p1351_p1 }
   0xa   :  { %p1354_p4 = pnand %p1353_p3, %p1347_p0 }
   0xc   :  { %1357 = shalt.err (!%p1354_p4)
}
   0xd   :  { %35 = dma.hbm_to_vmem [thread:$0]  %s1627_s1, 32, %s33_s19, [#allocation6]  }
   0xe   :  { %s1366_s25 = scalar_lea.vmem %s20_s21, 256  ;;  %p1371_p6 = scmp.lt.s32.totalorder %s20_s21, %s20_s21 }
   0xf   :  { %p1367_p5 = scmp.ne.s32.totalorder %s20_s21, %s1366_s25  ;;  %p1372_p7 = scmp.lt.s32.totalorder %s1366_s25, %s1366_s25 }
  0x11   :  { %p1373_p8 = por %p1372_p7, %p1371_p6 }
  0x13   :  { %p1374_p9 = pnand %p1373_p8, %p1367_p5 }
  0x15   :  { %1377 = shalt.err (!%p1374_p9)
}
  0x16   :  { %s1448_s26 = smov 128   ;;  %s1449_s27 = smov 8  }
  0x17   :  { %25 = dma.hbm_to_vmem [thread:$0]  %s1626_s0, 256, %s20_s21, [#allocation3], %s1448_s26, %s1448_s26, %s1449_s27  }
  0x18   :  { %s1450_s30 = smov [#allocation7]  }
  0x19   :  { %s41_s6 = sshll.u32 %s1450_s30, 4  ;;  %s42_s6 = int_to_ptr.vmem [resolvable:$true] %s41_s6 }
  0x1a   :  { %s1386_s7 = scalar_lea.vmem %s42_s6, 3072  ;;  %p1391_p11 = scmp.lt.s32.totalorder %s42_s6, %s42_s6 }
  0x1b   :  { %p1387_p10 = scmp.ne.s32.totalorder %s42_s6, %s1386_s7  ;;  %p1392_p12 = scmp.lt.s32.totalorder %s1386_s7, %s1386_s7 }
  0x1d   :  { %p1393_p13 = por %p1392_p12, %p1391_p11 }
  0x1f   :  { %p1394_p0 = pnand %p1393_p13, %p1387_p10 }
  0x21   :  { %1397 = shalt.err (!%p1394_p0)
}
  0x22   :  { %s1451_s1 = smov 64   ;;  %s1452_s8 = smov 4  }
  0x23   :  { %47 = dma.hbm_to_vmem [thread:$0]  %s1628_s2, 3072, %s42_s6, [#allocation6], %s1451_s1, %s1451_s1, %s1452_s8  }
  0x24   :  { %s1453_s0 = smov [#allocation8]  }
  0x25   :  { %s55_s11 = sshll.u32 %s1453_s0, 4  ;;  %s56_s11 = int_to_ptr.vmem [resolvable:$true] %s55_s11 }
  0x26   :  { %s1406_s12 = scalar_lea.vmem %s56_s11, 4096  ;;  %p1411_p2 = scmp.lt.s32.totalorder %s56_s11, %s56_s11 }
  0x27   :  { %p1407_p1 = scmp.ne.s32.totalorder %s56_s11, %s1406_s12  ;;  %p1412_p3 = scmp.lt.s32.totalorder %s1406_s12, %s1406_s12 }
  0x29   :  { %p1413_p4 = por %p1412_p3, %p1411_p2 }
  0x2b   :  { %p1414_p5 = pnand %p1413_p4, %p1407_p1 }
  0x2d   :  { %1417 = shalt.err (!%p1414_p5)
}
  0x2e   :  { %61 = dma.hbm_to_vmem [thread:$0]  %s1630_s4, 4096, %s56_s11, [#allocation9], %s1451_s1, %s1451_s1, %s1452_s8  }
  0x2f   :  { %1438 = dma.done.wait [#allocation3], 256  }
  0x30   :  { %1439 = vsyncadd [#allocation3], 4294967040 }
  0x31   :  { %1440 = dma.done.wait [#allocation6], 3104  }
  0x32   :  { %1441 = vsyncadd [#allocation6], 4294964192 }
  0x33   :  { %1442 = dma.done.wait [#allocation9], 4096  }
  0x34   :  { %1443 = vsyncadd [#allocation9], 4294963200  ;;  %v1454_v0 = vmov 0.0   ;;  %v1508_v1 = vld [vmem:[#allocation2] sm:$0xff]  ;;  %s1455_s2 = smov 32   ;;  %v1511_v2 = vld [vmem:[#allocation2 + $0x8] sm:$0xff]  ;;  %v126_v34 = vlaneseq }
  0x35   :  { %1104 = vmatprep.subr.bf16.mxu0 %v1454_v0  ;;  %1124 = vmatprep.subr.bf16.mxu1 %v1454_v0  ;;  %v1256_v3 = vld [vmem:[#allocation7 + $0x78] sm:$0xff]   ;;  %v972_v4 = vmul.f32 -1.442695, %v1508_v1  ;;  %v973_v5 = vmul.f32 -1.442695, %v1511_v2  ;;  %v1258_v7 = vld [vmem:[#allocation7 + $0x70] sm:$0xff]  }
  0x36   :  { %108 = vrot.lane.b32.xlu0 %v1508_v1, %s1455_s2  ;;  %1105 = vmatpush3.bf16.msra.mxu0 %v1256_v3  ;;  %v1257_v6 = vld [vmem:[#allocation7 + $0x38] sm:$0xff]   ;;  %v1259_v8 = vld [vmem:[#allocation7 + $0x30] sm:$0xff]   ;;  %v1260_v11 = vld [vmem:[#allocation7 + $0x68] sm:$0xff]   ;;  %vm1456_vm0 = vmmov 0   ;;  %v127_v37 = vshrl.u32 %v126_v34, 7 }
  0x37   :  { %1106 = vmatprep.subr.bf16.mxu0 %v1454_v0  ;;  %1312 = vpow2.f32 %v972_v4  ;;  %1125 = vmatpush3.bf16.msra.mxu1 %v1257_v6  ;;  %v1261_v13 = vld [vmem:[#allocation7 + $0x28] sm:$0xff]   ;;  %v1262_v16 = vld [vmem:[#allocation7 + $0x60] sm:$0xff]   ;;  %v1264_v20 = vld [vmem:[#allocation7 + $0x58] sm:$0xff]  }
  0x38   :  { %1314 = vpow2.f32 %v973_v5  ;;  %1126 = vmatprep.subr.bf16.mxu1 %v1454_v0  ;;  %v1263_v18 = vld [vmem:[#allocation7 + $0x20] sm:$0xff]   ;;  %v1265_v22 = vld [vmem:[#allocation7 + $0x18] sm:$0xff]   ;;  %v1266_v23 = vld [vmem:[#allocation7 + $0x50] sm:$0xff]   ;;  %1120 = vmatprep.mubr.msk.bf16.mxu0 %vm1456_vm0, %v1454_v0  ;;  %v1544_v40 = vsub.s32 0, %v127_v37 }
  0x39   :  { %v1267_v24 = vld [vmem:[#allocation7 + $0x10] sm:$0xff]   ;;  %1140 = vmatprep.mubr.msk.bf16.mxu1 %vm1456_vm0, %v1454_v0  ;;  %v1268_v25 = vld [vmem:[#allocation7 + $0x48] sm:$0xff]   ;;  %v1270_v28 = vld [vmem:[#allocation7 + $0x40] sm:$0xff]  }
  0x3a   :  { %110 = vrot.lane.b32.xlu0 %v1511_v2, %s1455_s2  ;;  %1107 = vmatpush3.bf16.msra.mxu0 %v1258_v7  ;;  %v1269_v26 = vld [vmem:[#allocation7 + $0x8] sm:$0xff]   ;;  %v1271_v30 = vld [vmem:[#allocation7] sm:$0xff]   ;;  %v121_v35 = vld [vmem:[#allocation5] sm:$0x1] }
  0x3b   :  { %1108 = vmatprep.subr.bf16.mxu0 %v1454_v0  ;;  %1127 = vmatpush3.bf16.msra.mxu1 %v1259_v8  ;;  %v122_v36 = vpack.c.bf16 %v121_v35, %v121_v35  ;;  %v330_v50 = vld [vmem:[#allocation5 + $0x1] sm:$0x1]  ;;  %v1273_v57 = vld [vmem:[#allocation7 + $0xb0] sm:$0xff]   ;;  %v1274_v59 = vld [vmem:[#allocation7 + $0xa8] sm:$0xff]  }
  0x3c   :  { %1128 = vmatprep.subr.bf16.mxu1 %v1454_v0  ;;  %v331_v51 = vpack.c.bf16 %v330_v50, %v330_v50  ;;  %v1272_v54 = vld [vmem:[#allocation7 + $0xb8] sm:$0xff]   ;;  %v1275_v61 = vld [vmem:[#allocation7 + $0xa0] sm:$0xff]   ;;  %v1300_v37 = vld [vmem:[#allocation8 + $0x48] sm:$0xff]  }
  0x3d   :  { %v124_v39 = vpack.i.b16 %v122_v36, %v122_v36  ;;  %v1276_v63 = vld [vmem:[#allocation7 + $0x98] sm:$0xff]   ;;  %v1279_v3 = vld [vmem:[#allocation7 + $0x80] sm:$0xff]   ;;  %v1298_v36 = vld [vmem:[#allocation8 + $0x50] sm:$0xff]  }
  0x3e   :  { %1109 = vmatpush3.bf16.msra.mxu0 %v1260_v11  ;;  %v333_v52 = vpack.i.b16 %v331_v51, %v331_v51  ;;  %v1282_v11 = vld [vmem:[#allocation8 + $0x28] sm:$0xff]   ;;  %v1291_v50 = vld [vmem:[#allocation8 + $0xf0] sm:$0xff]  }
  0x3f   :  { %1129 = vmatpush3.bf16.msra.mxu1 %v1261_v13  ;;  %1110 = vmatprep.subr.bf16.mxu0 %v1454_v0  ;;  %v129_v43 = vrot.slane %v124_v39, %v1544_v40  ;;  %v1284_v13 = vld [vmem:[#allocation8 + $0x18] sm:$0xff]   ;;  %v1293_v51 = vld [vmem:[#allocation8 + $0xe8] sm:$0xff]  }
  0x40   :  { %1130 = vmatprep.subr.bf16.mxu1 %v1454_v0  ;;  %v338_v53 = vrot.slane %v333_v52, %v1544_v40  ;;  %v1295_v52 = vld [vmem:[#allocation8 + $0xe0] sm:$0xff]  }
  0x42   :  { %1111 = vmatpush3.bf16.msra.mxu0 %v1262_v16  ;;  %v1287_v16 = vld [vmem:[#allocation8] sm:$0xff]  }
  0x43   :  { %1131 = vmatpush3.bf16.msra.mxu1 %v1263_v18  ;;  %1112 = vmatprep.subr.bf16.mxu0 %v1454_v0 }
  0x44   :  { %v1313_v9 = vpop.eup %1312  ;;  %1132 = vmatprep.subr.bf16.mxu1 %v1454_v0 }
  0x45   :  { %v1315_v10 = vpop.eup %1314  ;;  %v83_v12 = vadd.f32 1.0, %v1313_v9  ;;  %v1280_v9 = vld [vmem:[#allocation8 + $0x38] sm:$0xff]  }
  0x46   :  { %v84_v14 = vadd.f32 1.0, %v1315_v10  ;;  %1113 = vmatpush3.bf16.msra.mxu0 %v1264_v20  ;;  %v1281_v10 = vld [vmem:[#allocation8 + $0x30] sm:$0xff]  }
  0x47   :  { %1316 = vrcp.f32 %v83_v12  ;;  %1133 = vmatpush3.bf16.msra.mxu1 %v1265_v22  ;;  %1114 = vmatprep.subr.bf16.mxu0 %v1454_v0  ;;  %v1283_v12 = vld [vmem:[#allocation8 + $0x20] sm:$0xff]   ;;  %v1290_v22 = vld [vmem:[#allocation8 + $0x70] sm:$0xff]  }
  0x48   :  { %1318 = vrcp.f32 %v84_v14  ;;  %1134 = vmatprep.subr.bf16.mxu1 %v1454_v0  ;;  %v1285_v14 = vld [vmem:[#allocation8 + $0x10] sm:$0xff]  }
  0x4a   :  { %1115 = vmatpush3.bf16.msra.mxu0 %v1266_v23  ;;  %v1292_v23 = vld [vmem:[#allocation8 + $0x68] sm:$0xff]  }
  0x4b   :  { %1135 = vmatpush3.bf16.msra.mxu1 %v1267_v24  ;;  %1116 = vmatprep.subr.bf16.mxu0 %v1454_v0 }
  0x4c   :  { %1136 = vmatprep.subr.bf16.mxu1 %v1454_v0 }
  0x4e   :  { %1117 = vmatpush3.bf16.msra.mxu0 %v1268_v25 }
  0x4f   :  { %1137 = vmatpush3.bf16.msra.mxu1 %v1269_v26  ;;  %1118 = vmatprep.subr.bf16.mxu0 %v1454_v0 }
  0x50   :  { %1138 = vmatprep.subr.bf16.mxu1 %v1454_v0 }
  0x52   :  { %1119 = vmatpush3.bf16.msra.mxu0 %v1270_v28 }
  0x53   :  { %1139 = vmatpush3.bf16.msra.mxu1 %v1271_v30  ;;  %1144 = vmatprep.subr.bf16.mxu0 %v1454_v0 }
  0x54   :  { %v1317_v27 = vpop.eup %1316  ;;  %1164 = vmatprep.subr.bf16.mxu1 %v1454_v0 }
  0x55   :  { %v1319_v29 = vpop.eup %1318  ;;  %v89_v31 = vmul.f32 %v1317_v27, %v1508_v1  ;;  %v1294_v27 = vld [vmem:[#allocation8 + $0x60] sm:$0xff]  }
  0x56   :  { %v90_v32 = vmul.f32 %v1319_v29, %v1511_v2 }
  0x58   :  { %v91_v33 = vpack.c.bf16 %v90_v32, %v89_v31 }
  0x5a   :  { %1141 = vmatmul.mubr.bf16.vlgmr.msra.gmra.mxu1 %v91_v33  ;;  %v1296_v33 = vld [vmem:[#allocation8 + $0x58] sm:$0xff]  }
  0x5b   :  { %1180 = vmatprep.mubr.msk.bf16.mxu1 %vm1456_vm0, %v1454_v0 }
  0xa8   :  { %v109_v15 = vpop.permute.xlu0 %108 }
  0xa9   :  { %v112_v17 = vadd.f32 %v109_v15, %v1508_v1  ;;  %v1277_v1 = vld [vmem:[#allocation7 + $0x90] sm:$0xff]   ;;  %v1286_v15 = vld [vmem:[#allocation8 + $0x8] sm:$0xff]  }
  0xab   :  { %114 = vrot.lane.b32.xlu1 %v112_v17, %s1451_s1 }
  0xac   :  { %v111_v19 = vpop.permute.xlu0 %110 }
  0xad   :  { %v113_v21 = vadd.f32 %v111_v19, %v1511_v2  ;;  %v1278_v2 = vld [vmem:[#allocation7 + $0x88] sm:$0xff]  }
  0xaf   :  { %116 = vrot.lane.b32.xlu1 %v113_v21, %s1451_s1 }
 0x11a   :  { %v323_v5 = vpop.f32.mrf.mxu1 }
 0x11c   :  { %v1142_v6 = vpop.f32.mrf.mxu1 }
 0x11d   :  { %v115_v38 = vpop.permute.xlu1 %114 }
 0x11e   :  { %v118_v42 = vadd.f32 %v115_v38, %v112_v17  ;;  %v326_v7 = vpop.f32.mrf.mxu1  ;;  %v1288_v17 = vld [vmem:[#allocation8 + $0x78] sm:$0xff]   ;;  %v1302_v38 = vld [vmem:[#allocation8 + $0x40] sm:$0xff]  }
 0x11f   :  { %1165 = vmatpush3.bf16.msra.mxu1 %v1288_v17 }
 0x120   :  { %v1143_v8 = vpop.f32.mrf.mxu1  ;;  %1166 = vmatprep.subr.bf16.mxu1 %v1454_v0 }
 0x121   :  { %v117_v41 = vpop.permute.xlu1 %116 }
 0x122   :  { %v119_v44 = vadd.f32 %v117_v41, %v113_v21 }
 0x123   :  { %1167 = vmatpush3.bf16.msra.mxu1 %v1290_v22 }
 0x124   :  { %v120_v45 = vpack.c.bf16 %v119_v44, %v118_v42  ;;  %1168 = vmatprep.subr.bf16.mxu1 %v1454_v0 }
 0x126   :  { %v130_v46 = vsub.bf16 %v120_v45, %v129_v43  ;;  %v339_v56 = vsub.bf16 %v120_v45, %v338_v53  ;;  %v1297_v53 = vld [vmem:[#allocation8 + $0xd8] sm:$0xff]  }
 0x127   :  { %1169 = vmatpush3.bf16.msra.mxu1 %v1292_v23  ;;  %v1305_v23 = vld [vmem:[#allocation8 + $0xb0] sm:$0xff]  }
 0x128   :  { %v131_v47 = vand.u32 2147450879, %v130_v46  ;;  %v340_v58 = vand.u32 2147450879, %v339_v56  ;;  %1170 = vmatprep.subr.bf16.mxu1 %v1454_v0  ;;  %v1303_v56 = vld [vmem:[#allocation8 + $0xc0] sm:$0xff]  }
 0x12a   :  { %v132_v48 = vsub.bf16 0, %v131_v47  ;;  %v341_v60 = vsub.bf16 0, %v340_v58  ;;  %v821_v58 = vld [vmem:[%s1629_s3 + $0x2] sm:$0x1] }
 0x12b   :  { %1171 = vmatpush3.bf16.msra.mxu1 %v1294_v27 }
 0x12c   :  { %v134_v49 = vmul.bf16 1069105081, %v132_v48  ;;  %v343_v62 = vmul.bf16 1069105081, %v341_v60  ;;  %1172 = vmatprep.subr.bf16.mxu1 %v1454_v0  ;;  %v1289_v48 = vld [vmem:[#allocation8 + $0xf8] sm:$0xff]   ;;  %v822_v60 = vpack.c.bf16 %v821_v58, %v821_v58 }
 0x12e   :  { %1320 = vpow.bf16 %v134_v49 }
 0x12f   :  { %1322 = vpow.bf16 %v343_v62  ;;  %1173 = vmatpush3.bf16.msra.mxu1 %v1296_v33  ;;  %v824_v62 = vpack.i.b16 %v822_v60, %v822_v60 }
 0x130   :  { %1174 = vmatprep.subr.bf16.mxu1 %v1454_v0 }
 0x133   :  { %1175 = vmatpush3.bf16.msra.mxu1 %v1298_v36 }
 0x134   :  { %1176 = vmatprep.subr.bf16.mxu1 %v1454_v0 }
 0x137   :  { %1177 = vmatpush3.bf16.msra.mxu1 %v1300_v37 }
 0x138   :  { %1178 = vmatprep.subr.bf16.mxu1 %v1454_v0 }
 0x13b   :  { %1179 = vmatpush3.bf16.msra.mxu1 %v1302_v38 }
 0x13c   :  { %v1321_v55 = vpop.eup %1320  ;;  %1204 = vmatprep.subr.bf16.mxu1 %v1454_v0 }
 0x13d   :  { %1121 = vmatmul.mubr.bf16.vlgmr.msra.gmra.mxu0 %v1321_v55  ;;  %v1323_v4 = vpop.eup %1322  ;;  %v1301_v55 = vld [vmem:[#allocation8 + $0xc8] sm:$0xff]  }
 0x13e   :  { %1145 = vmatpush3.bf16.msra.mxu0 %v1272_v54  ;;  %1160 = vmatprep.mubr.msk.bf16.mxu0 %vm1456_vm0, %v1454_v0  ;;  %v1299_v54 = vld [vmem:[#allocation8 + $0xd0] sm:$0xff]  }
 0x13f   :  { %1146 = vmatprep.subr.bf16.mxu0 %v1454_v0 }
 0x142   :  { %1147 = vmatpush3.bf16.msra.mxu0 %v1273_v57  ;;  %v490_v57 = vld [vmem:[%s1629_s3] sm:$0x1] }
 0x143   :  { %1148 = vmatprep.subr.bf16.mxu0 %v1454_v0 }
 0x146   :  { %1149 = vmatpush3.bf16.msra.mxu0 %v1274_v59  ;;  %v491_v59 = vpack.c.bf16 %v490_v57, %v490_v57 }
 0x147   :  { %1150 = vmatprep.subr.bf16.mxu0 %v1454_v0 }
 0x14a   :  { %1151 = vmatpush3.bf16.msra.mxu0 %v1275_v61  ;;  %v493_v61 = vpack.i.b16 %v491_v59, %v491_v59 }
 0x14b   :  { %1152 = vmatprep.subr.bf16.mxu0 %v1454_v0 }
 0x14e   :  { %1153 = vmatpush3.bf16.msra.mxu0 %v1276_v63 }
 0x14f   :  { %1154 = vmatprep.subr.bf16.mxu0 %v1454_v0 }
 0x152   :  { %1155 = vmatpush3.bf16.msra.mxu0 %v1277_v1 }
 0x153   :  { %1156 = vmatprep.subr.bf16.mxu0 %v1454_v0 }
 0x156   :  { %1157 = vmatpush3.bf16.msra.mxu0 %v1278_v2 }
 0x157   :  { %1158 = vmatprep.subr.bf16.mxu0 %v1454_v0 }
 0x15a   :  { %1159 = vmatpush3.bf16.msra.mxu0 %v1279_v3  ;;  %v498_v3 = vrot.slane %v493_v61, %v1544_v40 }
 0x15b   :  { %1184 = vmatprep.subr.bf16.mxu0 %v1454_v0 }
 0x15d   :  { %1161 = vmatmul.mubr.bf16.vlgmr.msra.gmra.mxu0 %v1323_v4  ;;  %v829_v4 = vrot.slane %v824_v62, %v1544_v40 }
 0x15e   :  { %1200 = vmatprep.mubr.msk.bf16.mxu0 %vm1456_vm0, %v1454_v0  ;;  %1185 = vmatpush3.bf16.msra.mxu0 %v1280_v9 }
 0x15f   :  { %1186 = vmatprep.subr.bf16.mxu0 %v1454_v0 }
 0x162   :  { %1187 = vmatpush3.bf16.msra.mxu0 %v1281_v10 }
 0x163   :  { %1188 = vmatprep.subr.bf16.mxu0 %v1454_v0 }
 0x166   :  { %1189 = vmatpush3.bf16.msra.mxu0 %v1282_v11 }
 0x167   :  { %1190 = vmatprep.subr.bf16.mxu0 %v1454_v0 }
 0x16a   :  { %1191 = vmatpush3.bf16.msra.mxu0 %v1283_v12 }
 0x16b   :  { %1192 = vmatprep.subr.bf16.mxu0 %v1454_v0 }
 0x16e   :  { %1193 = vmatpush3.bf16.msra.mxu0 %v1284_v13 }
 0x16f   :  { %1194 = vmatprep.subr.bf16.mxu0 %v1454_v0 }
 0x172   :  { %1195 = vmatpush3.bf16.msra.mxu0 %v1285_v14 }
 0x173   :  { %1196 = vmatprep.subr.bf16.mxu0 %v1454_v0 }
 0x176   :  { %1197 = vmatpush3.bf16.msra.mxu0 %v1286_v15  ;;  %v699_v15 = vld [vmem:[%s1629_s3 + $0x1] sm:$0x1]  ;;  %s1457_s3 = smov [#allocation10]  }
 0x177   :  { %1198 = vmatprep.subr.bf16.mxu0 %v1454_v0  ;;  %s958_s20 = sshll.u32 %s1457_s3, 4  ;;  %s959_s20 = int_to_ptr.vmem [resolvable:$true] %s958_s20 }
 0x178   :  { %s1418_s21 = scalar_lea.vmem %s959_s20, 128  ;;  %p1423_p7 = scmp.lt.s32.totalorder %s959_s20, %s959_s20 }
 0x179   :  { %p1419_p6 = scmp.ne.s32.totalorder %s959_s20, %s1418_s21  ;;  %p1424_p8 = scmp.lt.s32.totalorder %s1418_s21, %s1418_s21 }
 0x17a   :  { %1199 = vmatpush3.bf16.msra.mxu0 %v1287_v16  ;;  %v700_v16 = vpack.c.bf16 %v699_v15, %v699_v15 }
 0x17b   :  { %1224 = vmatprep.subr.bf16.mxu0 %v1454_v0  ;;  %p1425_p9 = por %p1424_p8, %p1423_p7 }
 0x17c   :  { %v702_v17 = vpack.i.b16 %v700_v16, %v700_v16 }
 0x17d   :  { %p1426_p10 = pnand %p1425_p9, %p1419_p6 }
 0x1fd   :  { %v234_v18 = vpop.f32.mrf.mxu0 }
 0x1fe   :  { %v324_v24 = vadd.f32 %v323_v5, %v234_v18  ;;  %v707_v18 = vrot.slane %v702_v17, %v1544_v40  ;;  %v1307_v40 = vld [vmem:[#allocation8 + $0xa0] sm:$0xff]  }
 0x1ff   :  { %v1122_v19 = vpop.f32.mrf.mxu0 }
 0x200   :  { %v1304_v19 = vld [vmem:[#allocation8 + $0xb8] sm:$0xff]  }
 0x201   :  { %v237_v20 = vpop.f32.mrf.mxu0 }
 0x202   :  { %v327_v29 = vadd.f32 %v326_v7, %v237_v20 }
 0x203   :  { %v1123_v21 = vpop.f32.mrf.mxu0 }
 0x21d   :  { %v443_v25 = vpop.f32.mrf.mxu0 }
 0x21e   :  { %v1571_v26 = vadd.f32 %v443_v25, %v324_v24  ;;  %v1306_v25 = vld [vmem:[#allocation8 + $0xa8] sm:$0xff]  }
 0x21f   :  { %v1162_v28 = vpop.f32.mrf.mxu0 }
 0x220   :  { %v998_v30 = vmul.f32 -1.442695, %v1571_v26  ;;  %483 = vrot.lane.b32.xlu0 %v1571_v26, %s1451_s1  ;;  %v1308_v28 = vld [vmem:[#allocation8 + $0x98] sm:$0xff]  }
 0x221   :  { %v446_v31 = vpop.f32.mrf.mxu0 }
 0x222   :  { %1324 = vpow2.f32 %v998_v30  ;;  %v1577_v32 = vadd.f32 %v446_v31, %v327_v29  ;;  %v1309_v29 = vld [vmem:[#allocation8 + $0x90] sm:$0xff]   ;;  %v1310_v30 = vld [vmem:[#allocation8 + $0x88] sm:$0xff]   ;;  %v1311_v31 = vld [vmem:[#allocation8 + $0x80] sm:$0xff]  }
 0x223   :  { %v1163_v34 = vpop.f32.mrf.mxu0 }
 0x224   :  { %v999_v35 = vmul.f32 -1.442695, %v1577_v32  ;;  %485 = vrot.lane.b32.xlu1 %v1577_v32, %s1451_s1 }
 0x226   :  { %1326 = vpow2.f32 %v999_v35 }
 0x22f   :  { %v1325_v39 = vpop.eup %1324 }
 0x230   :  { %v458_v41 = vadd.f32 1.0, %v1325_v39 }
 0x232   :  { %1328 = vrcp.f32 %v458_v41 }
 0x233   :  { %v1327_v42 = vpop.eup %1326 }
 0x234   :  { %v459_v43 = vadd.f32 1.0, %v1327_v42 }
 0x236   :  { %1330 = vrcp.f32 %v459_v43 }
 0x23f   :  { %v1329_v44 = vpop.eup %1328 }
 0x240   :  { %v464_v46 = vmul.f32 %v1329_v44, %v1571_v26 }
 0x243   :  { %v1331_v45 = vpop.eup %1330 }
 0x244   :  { %v465_v47 = vmul.f32 %v1331_v45, %v1577_v32 }
 0x246   :  { %v466_v49 = vpack.c.bf16 %v465_v47, %v464_v46 }
 0x248   :  { %1201 = vmatmul.mubr.bf16.vlgmr.msra.gmra.mxu0 %v466_v49 }
 0x249   :  { %1225 = vmatpush3.bf16.msra.mxu0 %v1289_v48  ;;  %1240 = vmatprep.mubr.msk.bf16.mxu0 %vm1456_vm0, %v1454_v0 }
 0x24a   :  { %1226 = vmatprep.subr.bf16.mxu0 %v1454_v0 }
 0x24d   :  { %1227 = vmatpush3.bf16.msra.mxu0 %v1291_v50 }
 0x24e   :  { %1228 = vmatprep.subr.bf16.mxu0 %v1454_v0 }
 0x251   :  { %1229 = vmatpush3.bf16.msra.mxu0 %v1293_v51 }
 0x252   :  { %1230 = vmatprep.subr.bf16.mxu0 %v1454_v0 }
 0x255   :  { %1231 = vmatpush3.bf16.msra.mxu0 %v1295_v52 }
 0x256   :  { %1232 = vmatprep.subr.bf16.mxu0 %v1454_v0 }
 0x259   :  { %1233 = vmatpush3.bf16.msra.mxu0 %v1297_v53 }
 0x25a   :  { %1234 = vmatprep.subr.bf16.mxu0 %v1454_v0 }
 0x25d   :  { %1235 = vmatpush3.bf16.msra.mxu0 %v1299_v54 }
 0x25e   :  { %1236 = vmatprep.subr.bf16.mxu0 %v1454_v0 }
 0x261   :  { %1237 = vmatpush3.bf16.msra.mxu0 %v1301_v55 }
 0x262   :  { %1238 = vmatprep.subr.bf16.mxu0 %v1454_v0 }
 0x265   :  { %1239 = vmatpush3.bf16.msra.mxu0 %v1303_v56 }
 0x292   :  { %v484_v63 = vpop.permute.xlu0 %483 }
 0x293   :  { %v487_v2 = vadd.f32 %v484_v63, %v1571_v26 }
 0x296   :  { %v486_v1 = vpop.permute.xlu1 %485 }
 0x297   :  { %v488_v5 = vadd.f32 %v486_v1, %v1577_v32 }
 0x299   :  { %v489_v6 = vpack.c.bf16 %v488_v5, %v487_v2 }
 0x29b   :  { %v499_v7 = vsub.bf16 %v489_v6, %v498_v3  ;;  %v830_v8 = vsub.bf16 %v489_v6, %v829_v4  ;;  %v708_v22 = vsub.bf16 %v489_v6, %v707_v18 }
 0x29d   :  { %v500_v9 = vand.u32 2147450879, %v499_v7  ;;  %v831_v10 = vand.u32 2147450879, %v830_v8  ;;  %v709_v24 = vand.u32 2147450879, %v708_v22 }
 0x29f   :  { %v501_v11 = vsub.bf16 0, %v500_v9  ;;  %v832_v12 = vsub.bf16 0, %v831_v10  ;;  %v710_v26 = vsub.bf16 0, %v709_v24 }
 0x2a1   :  { %v503_v13 = vmul.bf16 1069105081, %v501_v11  ;;  %v834_v14 = vmul.bf16 1069105081, %v832_v12  ;;  %v712_v27 = vmul.bf16 1069105081, %v710_v26 }
 0x2a3   :  { %1332 = vpow.bf16 %v503_v13 }
 0x2a4   :  { %1334 = vpow.bf16 %v834_v14 }
 0x2a5   :  { %1336 = vpow.bf16 %v712_v27 }
 0x2b1   :  { %v1333_v20 = vpop.eup %1332 }
 0x2b2   :  { %1181 = vmatmul.mubr.bf16.vlgmr.msra.gmra.mxu1 %v1333_v20  ;;  %v1335_v21 = vpop.eup %1334 }
 0x2b3   :  { %1205 = vmatpush3.bf16.msra.mxu1 %v1304_v19  ;;  %1220 = vmatprep.mubr.msk.bf16.mxu1 %vm1456_vm0, %v1454_v0  ;;  %v1337_v32 = vpop.eup %1336 }
 0x2b4   :  { %1241 = vmatmul.mubr.bf16.vlgmr.msra.gmra.mxu0 %v1335_v21  ;;  %1206 = vmatprep.subr.bf16.mxu1 %v1454_v0 }
 0x2b7   :  { %1207 = vmatpush3.bf16.msra.mxu1 %v1305_v23 }
 0x2b8   :  { %1208 = vmatprep.subr.bf16.mxu1 %v1454_v0 }
 0x2bb   :  { %1209 = vmatpush3.bf16.msra.mxu1 %v1306_v25 }
 0x2bc   :  { %1210 = vmatprep.subr.bf16.mxu1 %v1454_v0 }
 0x2bf   :  { %1211 = vmatpush3.bf16.msra.mxu1 %v1307_v40 }
 0x2c0   :  { %1212 = vmatprep.subr.bf16.mxu1 %v1454_v0 }
 0x2c3   :  { %1213 = vmatpush3.bf16.msra.mxu1 %v1308_v28 }
 0x2c4   :  { %1214 = vmatprep.subr.bf16.mxu1 %v1454_v0 }
 0x2c7   :  { %1215 = vmatpush3.bf16.msra.mxu1 %v1309_v29 }
 0x2c8   :  { %1216 = vmatprep.subr.bf16.mxu1 %v1454_v0 }
 0x2cb   :  { %1217 = vmatpush3.bf16.msra.mxu1 %v1310_v30 }
 0x2cc   :  { %1218 = vmatprep.subr.bf16.mxu1 %v1454_v0 }
 0x2cf   :  { %1219 = vmatpush3.bf16.msra.mxu1 %v1311_v31 }
 0x2d2   :  { %1221 = vmatmul.mubr.bf16.vlgmr.msra.gmra.mxu1 %v1337_v32 }
 0x308   :  { %v692_v33 = vpop.f32.mrf.mxu0 }
 0x30a   :  { %v1202_v34 = vpop.f32.mrf.mxu0 }
 0x30c   :  { %v695_v35 = vpop.f32.mrf.mxu0 }
 0x30e   :  { %v1203_v36 = vpop.f32.mrf.mxu0 }
 0x372   :  { %v603_v37 = vpop.f32.mrf.mxu1 }
 0x373   :  { %v693_v47 = vadd.f32 %v692_v33, %v603_v37 }
 0x374   :  { %v934_v38 = vpop.f32.mrf.mxu0  ;;  %v1182_v39 = vpop.f32.mrf.mxu1 }
 0x376   :  { %v1242_v41 = vpop.f32.mrf.mxu0  ;;  %v606_v42 = vpop.f32.mrf.mxu1 }
 0x377   :  { %v696_v49 = vadd.f32 %v695_v35, %v606_v42 }
 0x378   :  { %v937_v43 = vpop.f32.mrf.mxu0  ;;  %v1183_v44 = vpop.f32.mrf.mxu1 }
 0x37a   :  { %v1243_v45 = vpop.f32.mrf.mxu0 }
 0x392   :  { %v812_v46 = vpop.f32.mrf.mxu1 }
 0x393   :  { %v819_v0 = vadd.f32 %v812_v46, %v693_v47 }
 0x394   :  { %v1222_v48 = vpop.f32.mrf.mxu1 }
 0x395   :  { %v941_v53 = vadd.f32 %v934_v38, %v819_v0 }
 0x396   :  { %v815_v50 = vpop.f32.mrf.mxu1 }
 0x397   :  { %v820_v51 = vadd.f32 %v815_v50, %v696_v49 }
 0x398   :  { %v1223_v52 = vpop.f32.mrf.mxu1 }
 0x399   :  { %v942_v54 = vadd.f32 %v937_v43, %v820_v51 }
 0x39b   :  { %v1039_v55 = vpack.c.bf16 %v942_v54, %v941_v53 }
 0x39d   :  { %1040 = vst [vmem:[#allocation10] sm:$0xff] %v1039_v55  }
 0x39e   :  { %1429 = shalt.err (!%p1426_p10)
}
 0x39f   :  { %964 = dma.vmem_to_hbm [thread:$0]  %s959_s20, 128, %s1631_s5, [#allocation4], %s1451_s1, %s1451_s1, %s1452_s8  }
 0x3a0   :  { %1444 = dma.done.wait [#allocation4], 128  }
 0x3a1   :  { %1445 = vsyncadd [#allocation4], 4294967168 }
 0x3a2   :  { %968 = vsyncpa [#allocation3], 1 }
 0x3a3   :  { %969 = vsyncpa [#allocation6], 1 }
 0x3a4   :  { %970 = vsyncpa [#allocation9], 1 }
 0x3a5   :  { %971 = vsyncpa [#allocation4], 1 }

</bundles_post_ra>
